<compile_context>
chip_gen: v5e
topology: v5e:2x2
jax: 0.10.0
libtpu: 0.0.40
codegen_flags: <defaults>
</compile_context>

<pallas_src>
import jax
import jax.numpy as jnp
from jax.experimental import pallas as pl
from jax.experimental.pallas import tpu as pltpu


def _make_kernel(M):
    """Fused per-batch-block kernel; all dims static via closure/ref shapes."""

    def kernel(x_ref, w1_ref, b1_ref, w2_ref, b2_ref, mask_ref, seg_ref,
               wfc_ref, bfc_ref, out_ref, q_ref, acc_ref):
        # x_ref   : (M, W*C1)      stacked height-padded input slabs (Nb images)
        # w1_ref  : (3, W*C1, W*C2) banded conv1 weights (BN1 scale folded)
        # b1_ref  : (1, W*C2)       BN1 bias tiled per lane group
        # w2_ref  : (3, W*C2, W*C3) banded conv2 weights (BN2 scale folded)
        # b2_ref  : (1, W*C3)       BN2 bias tiled per lane group
        # mask_ref: (M, 1)          1.0 on valid image rows, 0.0 on pad rows
        # seg_ref : (Nb, M)         per-image valid-row pooling (segment) matrix
        # wfc_ref : (W*C3, NCp)     fc weight expanded over w, /(H*W) folded
        # bfc_ref : (1, NCp)        fc bias (padded to 128 lanes)
        # out_ref : (Nb, NCp)       logits block
        # q_ref   : (M, W*C2)       VMEM scratch: conv1 out == conv2 padded input
        # acc_ref : (M, W*C3)       VMEM scratch: conv2 accumulator

        x = x_ref[...]                                           # (M, W*C1)

        # ---- conv1 (+ folded BN1 scale): 3 banded MXU matmuls ----
        # output row j of the padded grid gets contributions
        #   P[j-1]@W[kh=0] + P[j]@W[kh=1] + P[j+1]@W[kh=2]
        # realized as sublane rotates of the matmul results (XLU, cheap).
        q_ref[...] = pltpu.roll(
            jnp.dot(x, w1_ref[0], preferred_element_type=jnp.float32),
            shift=1, axis=0)
        q_ref[...] += jnp.dot(x, w1_ref[1], preferred_element_type=jnp.float32)
        q_ref[...] += pltpu.roll(
            jnp.dot(x, w1_ref[2], preferred_element_type=jnp.float32),
            shift=M - 1, axis=0)
        # bias + ReLU, and zero the per-image padding rows so q_ref is directly
        # conv2's height-padded input slab.
        q_ref[...] = mask_ref[...] * jnp.maximum(q_ref[...] + b1_ref[...], 0.0)

        # ---- conv2 (+ folded BN2 scale): 3 banded MXU matmuls ----
        q = q_ref[...]                                           # (M, W*C2)
        acc_ref[...] = pltpu.roll(
            jnp.dot(q, w2_ref[0], preferred_element_type=jnp.float32),
            shift=1, axis=0)
        acc_ref[...] += jnp.dot(q, w2_ref[1], preferred_element_type=jnp.float32)
        acc_ref[...] += pltpu.roll(
            jnp.dot(q, w2_ref[2], preferred_element_type=jnp.float32),
            shift=M - 1, axis=0)
        y2 = jnp.maximum(acc_ref[...] + b2_ref[...], 0.0)        # (M, W*C3)

        # ---- fused global average pool + fc ----
        # seg selects only the valid rows of each image, so y2's pad rows never
        # contribute; the 1/(H*W) factor is folded into wfc.
        pooled = jnp.dot(seg_ref[...], y2,
                         preferred_element_type=jnp.float32)      # (Nb, W*C3)
        out_ref[...] = (jnp.dot(pooled, wfc_ref[...],
                                preferred_element_type=jnp.float32)
                        + bfc_ref[...])

    return kernel


def _banded_weights(w_scaled, W):
    """(3,3,Ci,Co) scaled HWIO conv weight -> (3, W*Ci, W*Co) banded per-kh.

    Band[kh][(wi,ci),(wo,co)] = w[kh, kw, ci, co] with kw = wi - wo + 1 if in
    [0,2], else 0 -- i.e. the kw taps and SAME width zero-padding are folded in.
    """
    _, _, Ci, Co = w_scaled.shape
    bands = []
    for kh in range(3):
        bb = jnp.zeros((W, Ci, W, Co), jnp.float32)
        for kw in range(3):
            offs = kw - 1
            # sel[wi, wo] = 1 iff wi == wo + offs
            sel = jnp.eye(W, W, k=-offs, dtype=jnp.float32)
            bb = bb + sel[:, None, :, None] * w_scaled[kh, kw][None, :, None, :]
        bands.append(bb.reshape(W * Ci, W * Co))
    return jnp.stack(bands)                                       # (3, W*Ci, W*Co)


def simple_cnn_forward(x_nchw, w1_hwio, s1, b1, w2_hwio, s2, b2, wfc, bfc,
                       *, block_b=8):
    """NCHW input (PyTorch convention) -> logits (B, num_classes).

    w1_hwio: (3,3,3,8), w2_hwio: (3,3,8,16) conv weights in HWIO.
    s1,b1 / s2,b2: folded eval-mode BN scale/bias, shape (1, C).
    wfc: (16, num_classes) (torch fc weight transposed), bfc: (1, num_classes).
    block_b: images per grid step (8 -> M=144 fits v5e; use 16 on v6e/v7x).
    """
    x = jnp.transpose(x_nchw, (0, 2, 3, 1)).astype(jnp.float32)   # NCHW -> NHWC
    B, H, W, C1 = x.shape
    C2 = w1_hwio.shape[-1]
    C3 = w2_hwio.shape[-1]
    num_classes = wfc.shape[-1]

    Nb = block_b
    Hp = H + 2                       # per-image height-padded rows
    M = Nb * Hp                      # stacked LHS rows per grid step
    assert (M % 8) == 0, "Nb*(H+2) must be sublane-aligned"
    B_pad = ((B + Nb - 1) // Nb) * Nb

    # ---------- plain-JAX packing glue (outside the kernel) ----------
    # height-pad + channel-interleave: (B_pad*(H+2), W*C1); width padding is
    # folded into the banded weights, so no width pad here.
    xp = jnp.pad(x, ((0, B_pad - B), (1, 1), (0, 0), (0, 0)))     # (B_pad,Hp,W,C1)
    xs = xp.reshape(B_pad * Hp, W * C1)

    # fold BN scale into conv weights (exact: eval-mode BN is affine) and build
    # the per-kh banded weights.
    w1s = w1_hwio.astype(jnp.float32) * s1.reshape(1, 1, 1, C2)
    w2s = w2_hwio.astype(jnp.float32) * s2.reshape(1, 1, 1, C3)
    w1b = _banded_weights(w1s, W)                                 # (3, W*C1, W*C2)
    w2b = _banded_weights(w2s, W)                                 # (3, W*C2, W*C3)
    bias1 = jnp.tile(b1.reshape(1, C2).astype(jnp.float32), (1, W))  # (1, W*C2)
    bias2 = jnp.tile(b2.reshape(1, C3).astype(jnp.float32), (1, W))  # (1, W*C3)

    # per-image pad-row mask and valid-row pooling (segment) matrix
    loc = jnp.arange(M) % Hp
    valid = (loc >= 1) & (loc <= H)
    mask = valid.astype(jnp.float32).reshape(M, 1)                # (M, 1)
    img = jnp.arange(M) // Hp
    seg = ((img[None, :] == jnp.arange(Nb)[:, None]) & valid[None, :])
    seg = seg.astype(jnp.float32)                                 # (Nb, M)

    # fc weight expanded over w with the global-avg-pool factor folded in;
    # logits padded to 128 lanes for an unmasked, lane-dense output store.
    NC_pad = ((num_classes + 127) // 128) * 128
    wfc_exp = jnp.tile(wfc.astype(jnp.float32), (W, 1)) / float(H * W)
    wfc_exp = jnp.pad(wfc_exp, ((0, 0), (0, NC_pad - num_classes)))  # (W*C3, NCp)
    bfc_p = jnp.pad(bfc.reshape(1, num_classes).astype(jnp.float32),
                    ((0, 0), (0, NC_pad - num_classes)))             # (1, NCp)

    kernel = _make_kernel(M)
    grid = (B_pad // Nb,)

    out = pl.pallas_call(
        kernel,
        out_shape=jax.ShapeDtypeStruct((B_pad, NC_pad), jnp.float32),
        grid=grid,
        in_specs=[
            pl.BlockSpec((M, W * C1), lambda i: (i, 0)),           # x slab
            pl.BlockSpec((3, W * C1, W * C2), lambda i: (0, 0, 0)),  # w1 banded
            pl.BlockSpec((1, W * C2), lambda i: (0, 0)),           # bias1
            pl.BlockSpec((3, W * C2, W * C3), lambda i: (0, 0, 0)),  # w2 banded
            pl.BlockSpec((1, W * C3), lambda i: (0, 0)),           # bias2
            pl.BlockSpec((M, 1), lambda i: (0, 0)),                # pad-row mask
            pl.BlockSpec((Nb, M), lambda i: (0, 0)),               # segment matrix
            pl.BlockSpec((W * C3, NC_pad), lambda i: (0, 0)),      # fc weight
            pl.BlockSpec((1, NC_pad), lambda i: (0, 0)),           # fc bias
        ],
        out_specs=pl.BlockSpec((Nb, NC_pad), lambda i: (i, 0)),
        scratch_shapes=[
            pltpu.VMEM((M, W * C2), jnp.float32),   # conv1 result / conv2 input
            pltpu.VMEM((M, W * C3), jnp.float32),   # conv2 accumulator
        ],
        compiler_params=pltpu.CompilerParams(
            dimension_semantics=("parallel",),
            vmem_limit_bytes=8 * 1024 * 1024),
    )(xs, w1b, bias1, w2b, bias2, mask, seg, wfc_exp, bfc_p)

    return out[:B, :num_classes]


def reference_forward(x_nchw, w1_hwio, s1, b1, w2_hwio, s2, b2, wfc, bfc):
    """Pure-JAX reference (same math) for a correctness check."""
    x = jnp.transpose(x_nchw, (0, 2, 3, 1)).astype(jnp.float32)

    def conv(z, w):
        return jax.lax.conv_general_dilated(
            z, w, window_strides=(1, 1), padding="SAME",
            dimension_numbers=("NHWC", "HWIO", "NHWC"))

    y = jnp.maximum(conv(x, w1_hwio) * s1 + b1, 0.0)
    y = jnp.maximum(conv(y, w2_hwio) * s2 + b2, 0.0)
    pooled = jnp.mean(y, axis=(1, 2))
    return pooled @ wfc + bfc


def fold_bn(gamma, beta, mean, var, eps=1e-5):
    scale = gamma / jnp.sqrt(var + eps)
    bias = beta - mean * scale
    return scale.reshape(1, -1), bias.reshape(1, -1)


if __name__ == "__main__":
    num_classes = 10
    B, Cin, H, W = 16, 3, 16, 16         # NCHW input, PyTorch convention

    key = jax.random.PRNGKey(0)
    ks = jax.random.split(key, 12)

    # input
    x = jax.random.normal(ks[0], (B, Cin, H, W), jnp.float32)

    # conv1: torch weight (8, 3, 3, 3) == HWIO (3, 3, 3, 8) here
    w1_hwio = jax.random.normal(ks[1], (3, 3, 3, 8), jnp.float32) * 0.2
    # conv2: torch weight (16, 8, 3, 3) == HWIO (3, 3, 8, 16) here
    w2_hwio = jax.random.normal(ks[2], (3, 3, 8, 16), jnp.float32) * 0.1

    # bn1 / bn2 parameters (deterministic, eval-mode running stats)
    g1 = 0.5 + jax.random.uniform(ks[3], (8,), jnp.float32)
    be1 = jax.random.normal(ks[4], (8,), jnp.float32) * 0.1
    m1 = jax.random.normal(ks[5], (8,), jnp.float32) * 0.1
    v1 = 0.5 + jax.random.uniform(ks[6], (8,), jnp.float32)
    g2 = 0.5 + jax.random.uniform(ks[7], (16,), jnp.float32)
    be2 = jax.random.normal(ks[8], (16,), jnp.float32) * 0.1
    m2 = jax.random.normal(ks[9], (16,), jnp.float32) * 0.1
    v2 = 0.5 + jax.random.uniform(ks[10], (16,), jnp.float32)
    s1, b1 = fold_bn(g1, be1, m1, v1)
    s2, b2 = fold_bn(g2, be2, m2, v2)

    # fc: torch Linear(16, 10) -> weight (10, 16); stored pre-transposed (16, 10)
    wfc = jax.random.normal(ks[11], (16, num_classes), jnp.float32) * 0.2
    bfc = jnp.linspace(-0.1, 0.1, num_classes, dtype=jnp.float32).reshape(1, -1)

    out = simple_cnn_forward(x, w1_hwio, s1, b1, w2_hwio, s2, b2, wfc, bfc)
    out = jax.block_until_ready(out)

    ref = reference_forward(x, w1_hwio, s1, b1, w2_hwio, s2, b2, wfc, bfc)
    ref = jax.block_until_ready(ref)

    assert out.shape == (B, num_classes)
    # tolerance accommodates the default MXU f32 (bf16-pass) decomposition in
    # both the kernel and the XLA conv reference path
    assert jnp.allclose(out, ref, rtol=2e-2, atol=2e-2), (out, ref)

    print("KERNEL_OK")
</pallas_src>

<mosaic_0001>
module attributes {stable_mosaic.version = 11 : i64} {
  func.func @kernel(%arg0: i32, %arg1: memref<144x48xf32, #tpu.memory_space<vmem>>, %arg2: memref<3x48x128xf32, #tpu.memory_space<vmem>>, %arg3: memref<1x128xf32, #tpu.memory_space<vmem>>, %arg4: memref<3x128x256xf32, #tpu.memory_space<vmem>>, %arg5: memref<1x256xf32, #tpu.memory_space<vmem>>, %arg6: memref<144x1xf32, #tpu.memory_space<vmem>>, %arg7: memref<8x144xf32, #tpu.memory_space<vmem>>, %arg8: memref<256x128xf32, #tpu.memory_space<vmem>>, %arg9: memref<1x128xf32, #tpu.memory_space<vmem>>, %arg10: memref<8x128xf32, #tpu.memory_space<vmem>>, %arg11: memref<144x128xf32, #tpu.memory_space<vmem>>, %arg12: memref<144x256xf32, #tpu.memory_space<vmem>>) attributes {dimension_semantics = [#tpu.dimension_semantics<parallel>], iteration_bounds = array<i64: 2>, scalar_prefetch = 0 : i64, scratch_operands = 2 : i64, tpu.core_type = #tpu.core_type<tc>, window_params = [{transform_indices = @transform_0, window_bounds = array<i64: 144, 48>}, {pipeline_mode = #tpu.pipeline_mode<synchronous>, transform_indices = @transform_1, window_bounds = array<i64: 3, 48, 128>}, {pipeline_mode = #tpu.pipeline_mode<synchronous>, transform_indices = @transform_2, window_bounds = array<i64: 1, 128>}, {pipeline_mode = #tpu.pipeline_mode<synchronous>, transform_indices = @transform_3, window_bounds = array<i64: 3, 128, 256>}, {pipeline_mode = #tpu.pipeline_mode<synchronous>, transform_indices = @transform_4, window_bounds = array<i64: 1, 256>}, {pipeline_mode = #tpu.pipeline_mode<synchronous>, transform_indices = @transform_5, window_bounds = array<i64: 144, 1>}, {pipeline_mode = #tpu.pipeline_mode<synchronous>, transform_indices = @transform_6, window_bounds = array<i64: 8, 144>}, {pipeline_mode = #tpu.pipeline_mode<synchronous>, transform_indices = @transform_7, window_bounds = array<i64: 256, 128>}, {pipeline_mode = #tpu.pipeline_mode<synchronous>, transform_indices = @transform_8, window_bounds = array<i64: 1, 128>}, {transform_indices = @transform_9, window_bounds = array<i64: 8, 128>}]} {
    %c0 = arith.constant 0 : index
    %c0_0 = arith.constant 0 : index
    %0 = vector.load %arg1[%c0, %c0_0] : memref<144x48xf32, #tpu.memory_space<vmem>>, vector<144x48xf32>
    %c0_1 = arith.constant 0 : index
    %c0_2 = arith.constant 0 : index
    %c0_3 = arith.constant 0 : index
    %1 = vector.load %arg2[%c0_1, %c0_2, %c0_3] : memref<3x48x128xf32, #tpu.memory_space<vmem>>, vector<1x48x128xf32>
    %2 = vector.shape_cast %1 : vector<1x48x128xf32> to vector<48x128xf32>
    %cst = arith.constant dense<0.000000e+00> : vector<144x128xf32>
    %3 = tpu.matmul %0, %2, %cst {dimension_numbers = #tpu.dot_dimension_numbers<[1], [0], [0], [1], [0, 0, 1, 1], [], []>} : vector<144x48xf32>, vector<48x128xf32>, vector<144x128xf32> -> vector<144x128xf32>
    %c1_i32 = arith.constant 1 : i32
    %4 = tpu.dynamic_rotate %3 by %c1_i32 dim 0 : vector<144x128xf32>, i32 -> vector<144x128xf32>
    %c0_4 = arith.constant 0 : index
    %c0_5 = arith.constant 0 : index
    %5 = vector.load %arg11[%c0_4, %c0_5] : memref<144x128xf32, #tpu.memory_space<vmem>>, vector<144x128xf32>
    tpu.vector_store %arg11[%c0_4, %c0_5], %4 {strides = array<i32>} : memref<144x128xf32, #tpu.memory_space<vmem>>, vector<144x128xf32>,
    %c0_6 = arith.constant 0 : index
    %c0_7 = arith.constant 0 : index
    %6 = vector.load %arg11[%c0_6, %c0_7] : memref<144x128xf32, #tpu.memory_space<vmem>>, vector<144x128xf32>
    %c1 = arith.constant 1 : index
    %c0_8 = arith.constant 0 : index
    %c0_9 = arith.constant 0 : index
    %7 = vector.load %arg2[%c1, %c0_8, %c0_9] : memref<3x48x128xf32, #tpu.memory_space<vmem>>, vector<1x48x128xf32>
    %8 = vector.shape_cast %7 : vector<1x48x128xf32> to vector<48x128xf32>
    %cst_10 = arith.constant dense<0.000000e+00> : vector<144x128xf32>
    %9 = tpu.matmul %0, %8, %cst_10 {dimension_numbers = #tpu.dot_dimension_numbers<[1], [0], [0], [1], [0, 0, 1, 1], [], []>} : vector<144x48xf32>, vector<48x128xf32>, vector<144x128xf32> -> vector<144x128xf32>
    %10 = arith.addf %6, %9 : vector<144x128xf32>
    %c0_11 = arith.constant 0 : index
    %c0_12 = arith.constant 0 : index
    %11 = vector.load %arg11[%c0_11, %c0_12] : memref<144x128xf32, #tpu.memory_space<vmem>>, vector<144x128xf32>
    tpu.vector_store %arg11[%c0_11, %c0_12], %10 {strides = array<i32>} : memref<144x128xf32, #tpu.memory_space<vmem>>, vector<144x128xf32>,
    %c0_13 = arith.constant 0 : index
    %c0_14 = arith.constant 0 : index
    %12 = vector.load %arg11[%c0_13, %c0_14] : memref<144x128xf32, #tpu.memory_space<vmem>>, vector<144x128xf32>
    %c2 = arith.constant 2 : index
    %c0_15 = arith.constant 0 : index
    %c0_16 = arith.constant 0 : index
    %13 = vector.load %arg2[%c2, %c0_15, %c0_16] : memref<3x48x128xf32, #tpu.memory_space<vmem>>, vector<1x48x128xf32>
    %14 = vector.shape_cast %13 : vector<1x48x128xf32> to vector<48x128xf32>
    %cst_17 = arith.constant dense<0.000000e+00> : vector<144x128xf32>
    %15 = tpu.matmul %0, %14, %cst_17 {dimension_numbers = #tpu.dot_dimension_numbers<[1], [0], [0], [1], [0, 0, 1, 1], [], []>} : vector<144x48xf32>, vector<48x128xf32>, vector<144x128xf32> -> vector<144x128xf32>
    %c143_i32 = arith.constant 143 : i32
    %16 = tpu.dynamic_rotate %15 by %c143_i32 dim 0 : vector<144x128xf32>, i32 -> vector<144x128xf32>
    %17 = arith.addf %12, %16 : vector<144x128xf32>
    %c0_18 = arith.constant 0 : index
    %c0_19 = arith.constant 0 : index
    %18 = vector.load %arg11[%c0_18, %c0_19] : memref<144x128xf32, #tpu.memory_space<vmem>>, vector<144x128xf32>
    tpu.vector_store %arg11[%c0_18, %c0_19], %17 {strides = array<i32>} : memref<144x128xf32, #tpu.memory_space<vmem>>, vector<144x128xf32>,
    %c0_20 = arith.constant 0 : index
    %c0_21 = arith.constant 0 : index
    %19 = vector.load %arg6[%c0_20, %c0_21] : memref<144x1xf32, #tpu.memory_space<vmem>>, vector<144x1xf32>
    %c0_22 = arith.constant 0 : index
    %c0_23 = arith.constant 0 : index
    %20 = vector.load %arg11[%c0_22, %c0_23] : memref<144x128xf32, #tpu.memory_space<vmem>>, vector<144x128xf32>
    %c0_24 = arith.constant 0 : index
    %c0_25 = arith.constant 0 : index
    %21 = vector.load %arg3[%c0_24, %c0_25] : memref<1x128xf32, #tpu.memory_space<vmem>>, vector<1x128xf32>
    %22 = vector.broadcast %21 : vector<1x128xf32> to vector<144x128xf32>
    %23 = arith.addf %20, %22 : vector<144x128xf32>
    %cst_26 = arith.constant 0.000000e+00 : f32
    %24 = vector.broadcast %cst_26 : f32 to vector<144x128xf32>
    %25 = arith.maximumf %23, %24 : vector<144x128xf32>
    %26 = vector.broadcast %19 : vector<144x1xf32> to vector<144x128xf32>
    %27 = arith.mulf %26, %25 : vector<144x128xf32>
    %c0_27 = arith.constant 0 : index
    %c0_28 = arith.constant 0 : index
    %28 = vector.load %arg11[%c0_27, %c0_28] : memref<144x128xf32, #tpu.memory_space<vmem>>, vector<144x128xf32>
    tpu.vector_store %arg11[%c0_27, %c0_28], %27 {strides = array<i32>} : memref<144x128xf32, #tpu.memory_space<vmem>>, vector<144x128xf32>,
    %c0_29 = arith.constant 0 : index
    %c0_30 = arith.constant 0 : index
    %29 = vector.load %arg11[%c0_29, %c0_30] : memref<144x128xf32, #tpu.memory_space<vmem>>, vector<144x128xf32>
    %c0_31 = arith.constant 0 : index
    %c0_32 = arith.constant 0 : index
    %c0_33 = arith.constant 0 : index
    %30 = vector.load %arg4[%c0_31, %c0_32, %c0_33] : memref<3x128x256xf32, #tpu.memory_space<vmem>>, vector<1x128x256xf32>
    %31 = vector.shape_cast %30 : vector<1x128x256xf32> to vector<128x256xf32>
    %cst_34 = arith.constant dense<0.000000e+00> : vector<144x256xf32>
    %32 = tpu.matmul %29, %31, %cst_34 {dimension_numbers = #tpu.dot_dimension_numbers<[1], [0], [0], [1], [0, 0, 1, 1], [], []>} : vector<144x128xf32>, vector<128x256xf32>, vector<144x256xf32> -> vector<144x256xf32>
    %c1_i32_35 = arith.constant 1 : i32
    %33 = tpu.dynamic_rotate %32 by %c1_i32_35 dim 0 : vector<144x256xf32>, i32 -> vector<144x256xf32>
    %c0_36 = arith.constant 0 : index
    %c0_37 = arith.constant 0 : index
    %34 = vector.load %arg12[%c0_36, %c0_37] : memref<144x256xf32, #tpu.memory_space<vmem>>, vector<144x256xf32>
    tpu.vector_store %arg12[%c0_36, %c0_37], %33 {strides = array<i32>} : memref<144x256xf32, #tpu.memory_space<vmem>>, vector<144x256xf32>,
    %c0_38 = arith.constant 0 : index
    %c0_39 = arith.constant 0 : index
    %35 = vector.load %arg12[%c0_38, %c0_39] : memref<144x256xf32, #tpu.memory_space<vmem>>, vector<144x256xf32>
    %c1_40 = arith.constant 1 : index
    %c0_41 = arith.constant 0 : index
    %c0_42 = arith.constant 0 : index
    %36 = vector.load %arg4[%c1_40, %c0_41, %c0_42] : memref<3x128x256xf32, #tpu.memory_space<vmem>>, vector<1x128x256xf32>
    %37 = vector.shape_cast %36 : vector<1x128x256xf32> to vector<128x256xf32>
    %cst_43 = arith.constant dense<0.000000e+00> : vector<144x256xf32>
    %38 = tpu.matmul %29, %37, %cst_43 {dimension_numbers = #tpu.dot_dimension_numbers<[1], [0], [0], [1], [0, 0, 1, 1], [], []>} : vector<144x128xf32>, vector<128x256xf32>, vector<144x256xf32> -> vector<144x256xf32>
    %39 = arith.addf %35, %38 : vector<144x256xf32>
    %c0_44 = arith.constant 0 : index
    %c0_45 = arith.constant 0 : index
    %40 = vector.load %arg12[%c0_44, %c0_45] : memref<144x256xf32, #tpu.memory_space<vmem>>, vector<144x256xf32>
    tpu.vector_store %arg12[%c0_44, %c0_45], %39 {strides = array<i32>} : memref<144x256xf32, #tpu.memory_space<vmem>>, vector<144x256xf32>,
    %c0_46 = arith.constant 0 : index
    %c0_47 = arith.constant 0 : index
    %41 = vector.load %arg12[%c0_46, %c0_47] : memref<144x256xf32, #tpu.memory_space<vmem>>, vector<144x256xf32>
    %c2_48 = arith.constant 2 : index
    %c0_49 = arith.constant 0 : index
    %c0_50 = arith.constant 0 : index
    %42 = vector.load %arg4[%c2_48, %c0_49, %c0_50] : memref<3x128x256xf32, #tpu.memory_space<vmem>>, vector<1x128x256xf32>
    %43 = vector.shape_cast %42 : vector<1x128x256xf32> to vector<128x256xf32>
    %cst_51 = arith.constant dense<0.000000e+00> : vector<144x256xf32>
    %44 = tpu.matmul %29, %43, %cst_51 {dimension_numbers = #tpu.dot_dimension_numbers<[1], [0], [0], [1], [0, 0, 1, 1], [], []>} : vector<144x128xf32>, vector<128x256xf32>, vector<144x256xf32> -> vector<144x256xf32>
    %c143_i32_52 = arith.constant 143 : i32
    %45 = tpu.dynamic_rotate %44 by %c143_i32_52 dim 0 : vector<144x256xf32>, i32 -> vector<144x256xf32>
    %46 = arith.addf %41, %45 : vector<144x256xf32>
    %c0_53 = arith.constant 0 : index
    %c0_54 = arith.constant 0 : index
    %47 = vector.load %arg12[%c0_53, %c0_54] : memref<144x256xf32, #tpu.memory_space<vmem>>, vector<144x256xf32>
    tpu.vector_store %arg12[%c0_53, %c0_54], %46 {strides = array<i32>} : memref<144x256xf32, #tpu.memory_space<vmem>>, vector<144x256xf32>,
    %c0_55 = arith.constant 0 : index
    %c0_56 = arith.constant 0 : index
    %48 = vector.load %arg12[%c0_55, %c0_56] : memref<144x256xf32, #tpu.memory_space<vmem>>, vector<144x256xf32>
    %c0_57 = arith.constant 0 : index
    %c0_58 = arith.constant 0 : index
    %49 = vector.load %arg5[%c0_57, %c0_58] : memref<1x256xf32, #tpu.memory_space<vmem>>, vector<1x256xf32>
    %50 = vector.broadcast %49 : vector<1x256xf32> to vector<144x256xf32>
    %51 = arith.addf %48, %50 : vector<144x256xf32>
    %cst_59 = arith.constant 0.000000e+00 : f32
    %52 = vector.broadcast %cst_59 : f32 to vector<144x256xf32>
    %53 = arith.maximumf %51, %52 : vector<144x256xf32>
    %c0_60 = arith.constant 0 : index
    %c0_61 = arith.constant 0 : index
    %54 = vector.load %arg7[%c0_60, %c0_61] : memref<8x144xf32, #tpu.memory_space<vmem>>, vector<8x144xf32>
    %cst_62 = arith.constant dense<0.000000e+00> : vector<8x256xf32>
    %55 = tpu.matmul %54, %53, %cst_62 {dimension_numbers = #tpu.dot_dimension_numbers<[1], [0], [0], [1], [0, 0, 1, 1], [], []>} : vector<8x144xf32>, vector<144x256xf32>, vector<8x256xf32> -> vector<8x256xf32>
    %c0_63 = arith.constant 0 : index
    %c0_64 = arith.constant 0 : index
    %56 = vector.load %arg8[%c0_63, %c0_64] : memref<256x128xf32, #tpu.memory_space<vmem>>, vector<256x128xf32>
    %cst_65 = arith.constant dense<0.000000e+00> : vector<8x128xf32>
    %57 = tpu.matmul %55, %56, %cst_65 {dimension_numbers = #tpu.dot_dimension_numbers<[1], [0], [0], [1], [0, 0, 1, 1], [], []>} : vector<8x256xf32>, vector<256x128xf32>, vector<8x128xf32> -> vector<8x128xf32>
    %c0_66 = arith.constant 0 : index
    %c0_67 = arith.constant 0 : index
    %58 = vector.load %arg9[%c0_66, %c0_67] : memref<1x128xf32, #tpu.memory_space<vmem>>, vector<1x128xf32>
    %59 = vector.broadcast %58 : vector<1x128xf32> to vector<8x128xf32>
    %60 = arith.addf %57, %59 : vector<8x128xf32>
    %c0_68 = arith.constant 0 : index
    %c0_69 = arith.constant 0 : index
    %61 = vector.load %arg10[%c0_68, %c0_69] : memref<8x128xf32, #tpu.memory_space<vmem>>, vector<8x128xf32>
    tpu.vector_store %arg10[%c0_68, %c0_69], %60 {strides = array<i32>} : memref<8x128xf32, #tpu.memory_space<vmem>>, vector<8x128xf32>,
    return
  }
  func.func @transform_0(%arg0: i32) -> (i32, i32) {
    %c0_i32 = arith.constant 0 : i32
    %c0_i32_0 = arith.constant 0 : i32
    return %arg0, %c0_i32 : i32, i32
  }
  func.func @transform_1(%arg0: i32) -> (i32, i32, i32) {
    %c0_i32 = arith.constant 0 : i32
    %c0_i32_0 = arith.constant 0 : i32
    %c0_i32_1 = arith.constant 0 : i32
    %c0_i32_2 = arith.constant 0 : i32
    return %c0_i32, %c0_i32_0, %c0_i32_1 : i32, i32, i32
  }
  func.func @transform_2(%arg0: i32) -> (i32, i32) {
    %c0_i32 = arith.constant 0 : i32
    %c0_i32_0 = arith.constant 0 : i32
    %c0_i32_1 = arith.constant 0 : i32
    return %c0_i32, %c0_i32_0 : i32, i32
  }
  func.func @transform_3(%arg0: i32) -> (i32, i32, i32) {
    %c0_i32 = arith.constant 0 : i32
    %c0_i32_0 = arith.constant 0 : i32
    %c0_i32_1 = arith.constant 0 : i32
    %c0_i32_2 = arith.constant 0 : i32
    return %c0_i32, %c0_i32_0, %c0_i32_1 : i32, i32, i32
  }
  func.func @transform_4(%arg0: i32) -> (i32, i32) {
    %c0_i32 = arith.constant 0 : i32
    %c0_i32_0 = arith.constant 0 : i32
    %c0_i32_1 = arith.constant 0 : i32
    return %c0_i32, %c0_i32_0 : i32, i32
  }
  func.func @transform_5(%arg0: i32) -> (i32, i32) {
    %c0_i32 = arith.constant 0 : i32
    %c0_i32_0 = arith.constant 0 : i32
    %c0_i32_1 = arith.constant 0 : i32
    return %c0_i32, %c0_i32_0 : i32, i32
  }
  func.func @transform_6(%arg0: i32) -> (i32, i32) {
    %c0_i32 = arith.constant 0 : i32
    %c0_i32_0 = arith.constant 0 : i32
    %c0_i32_1 = arith.constant 0 : i32
    return %c0_i32, %c0_i32_0 : i32, i32
  }
  func.func @transform_7(%arg0: i32) -> (i32, i32) {
    %c0_i32 = arith.constant 0 : i32
    %c0_i32_0 = arith.constant 0 : i32
    %c0_i32_1 = arith.constant 0 : i32
    return %c0_i32, %c0_i32_0 : i32, i32
  }
  func.func @transform_8(%arg0: i32) -> (i32, i32) {
    %c0_i32 = arith.constant 0 : i32
    %c0_i32_0 = arith.constant 0 : i32
    %c0_i32_1 = arith.constant 0 : i32
    return %c0_i32, %c0_i32_0 : i32, i32
  }
  func.func @transform_9(%arg0: i32) -> (i32, i32) {
    %c0_i32 = arith.constant 0 : i32
    %c0_i32_0 = arith.constant 0 : i32
    return %arg0, %c0_i32 : i32, i32
  }
}

</mosaic_0001>

<bundles_post_ra>
// kernel: tpu_custom_call.1
= control target key start
LH: loop header
LB: loop body
LE: loop exit
PB: predicated region body
PF: predicated region fallthrough
CT: control target
= control target key end

     0   :  { %14 = vsyncpa [#allocation5], 0  ;;  %s3855_s0 = inlined_call_operand.vmem [shape: f32[288,48], index: 0, kind: input, shape index: {}]   ;;  %s3856_s1 = inlined_call_operand.vmem [shape: f32[3,48,128], index: 1, kind: input, shape index: {}]   ;;  %s3857_s2 = inlined_call_operand.vmem [shape: f32[1,128], index: 2, kind: input, shape index: {}]   ;;  %s3858_s3 = inlined_call_operand.hbm [shape: f32[3,128,256], index: 3, kind: input, shape index: {}]   ;;  %s3859_s4 = inlined_call_operand.vmem [shape: f32[1,256], index: 4, kind: input, shape index: {}]   ;;  %s3860_s5 = inlined_call_operand.vmem [shape: f32[144,1], index: 5, kind: input, shape index: {}]   ;;  %s3861_s6 = inlined_call_operand.vmem [shape: f32[8,144], index: 6, kind: input, shape index: {}]   ;;  %s3862_s7 = inlined_call_operand.vmem [shape: f32[256,128], index: 7, kind: input, shape index: {}]   ;;  %s3863_s8 = inlined_call_operand.vmem [shape: f32[1,128], index: 8, kind: input, shape index: {}]   ;;  %s3864_s9 = inlined_call_operand.hbm [shape: f32[16,128], index: 9, kind: output, shape index: {}]  }
   0x1   :  { %15 = vsyncpa [#allocation6], 0 }
   0x2   :  { %17 = vsyncpa [#allocation6 + $0x1], 0  ;;  %s2664_s30 = smov 0   ;;  %s2666_s10 = smov 0  }
   0x3   :  { %s2668_s11 = smov 0   ;;  %s2670_s12 = smov 0  }
   0x4 LB: > { %s2685_s13 = sadd.s32 4294967295, %s2608_s12   ;;  %s2362_s14 = sadd.s32 4294967294, %s2608_s12   ;;  %s2608_s12 = sphi %s2670_s12, %s3910_s12   ;;  %s2604_s11 = sphi %s2668_s11, %s3909_s11   ;;  %s2600_s10 = sphi %s2666_s10, %s3908_s10   ;;  %s2596_s30 = sphi %s2664_s30, %s3907_s30  }
   0x5   : > { %s2689_s15 = sadd.s32 1, %s2608_s12   ;;  %s224_s16 = sadd.s32 1, %s2604_s11 }
   0x6   : > { %s221_s17 = ssub.s32 %s2608_s12, %s2689_s15  ;;  %p234_p0 = scmp.ne.s32.totalorder %s2604_s11, %s2600_s10 }
   0x7   : > { %p222_p1 = scmp.eq.s32.totalorder %s221_s17, 0  ;;  %p235_p2 = scmp.eq.s32.totalorder %s2685_s13, 1 }
   0x8   : > { %p240_p3 = scmp.ne.s32.totalorder %s2600_s10, %s2596_s30  ;;  %p241_p4 = scmp.eq.s32.totalorder %s2362_s14, 1 }
   0x9   : > { %s2700_s18 = scalar_select %p222_p1, %s2604_s11, %s224_s16  }
   0xa   : > { %p2702_p5 = por %p235_p2, %p234_p0  ;;  %p2706_p6 = por %p241_p4, %p240_p3 }
   0xb   : > { %p2363_p7 = scmp.ge.s32.totalorder %s2608_s12, 1  ;;  %p248_p8 = scmp.lt.s32.totalorder %s2608_s12, 3 }
   0xc   : > { %p2468_p9 = scmp.eq.s32.totalorder %s2685_s13, 0  ;;  %s265_s23 = sshll.u32 %s3858_s3, 4  ;;  %s266_s23 = int_to_ptr.hbm [resolvable:$true] %s265_s23 }
   0xd   : > { %p249_p10 = pnand %p2363_p7, %p248_p8  ;;  %s2610_s24 = smov [#allocation4]  }
   0xe   : > { %s267_s25 = sshll.u32 %s2610_s24, 4  ;;  %s2611_s26 = smov 256   ;;  %s268_s25 = int_to_ptr.vmem [resolvable:$true] %s267_s25 }
   0xf   : > { %p2460_p11 = pneg %p249_p10  ;;  %s2612_s27 = smov 16  }
  0x10   : > { %307 = sbr.rel (%p249_p10) target bundleno = 940 (0x3ac), region = 56 }
  0x11   : > { %p2461_p12 = pnand %p2468_p9, %p2460_p11 }
  0x13   : > { %2463 = dma.hbm_to_vmem [thread:$0]  (!%p2461_p12), %s266_s23, 12288, %s268_s25, [#allocation5], %s2611_s26, %s2611_s26, %s2612_s27  }
  0x15   : > { %2587 = dma.done.wait (%p2468_p9), [#allocation5], 12288  }
  0x16   : > { %2589 = vsyncadd (%p2468_p9), [#allocation5], 4294955008  ;;  %s344_s28 = smul.u32 18, %s2685_s13  ;;  %v373_v0 = vld [vmem:[%s3856_s1 + $0x28] sm:$0xff]  ;;  %v2393_v1 = vld [vmem:[%s3856_s1 + $0x58] sm:$0xff]  ;;  %vm374_vm0 = vcmask 392192  }
  0x17   : > { %v372_v2 = vld [vmem:[%s3856_s1 + $0x20] sm:$0xff]  ;;  %439 = vmatpush.msra.mxu0 %v373_v0  ;;  %2442 = vmatpush.msra.mxu2 %v373_v0  ;;  %v2392_v3 = vld [vmem:[%s3856_s1 + $0x50] sm:$0xff]  ;;  %v371_v4 = vld [vmem:[%s3856_s1 + $0x18] sm:$0xff]  ;;  %v2613_v18 = vmov 0   ;;  %vm2114_vm3 = vcmask 130048   ;;  %s341_s25 = sand.u32 1, %s2600_s10  }
  0x18   : > { %p345_p13 = scmp.lt.s32.totalorder %s344_s28, 35  ;;  %2443 = vmatpush.msra.mxu3 %v373_v0  ;;  %592 = vmatpush.msra.mxu1 %v2393_v1  ;;  %v2391_v5 = vld [vmem:[%s3856_s1 + $0x48] sm:$0xff]  ;;  %v370_v6 = vld [vmem:[%s3856_s1 + $0x10] sm:$0xff]  ;;  %v2390_v7 = vld [vmem:[%s3856_s1 + $0x40] sm:$0xff] }
  0x19   : > { %440 = vmatpush.msra.mxu0 %v372_v2  ;;  %2444 = vmatpush.msra.mxu2 %v372_v2  ;;  %v369_v8 = vld [vmem:[%s3856_s1 + $0x8] sm:$0xff]  ;;  %v2389_v9 = vld [vmem:[%s3856_s1 + $0x38] sm:$0xff]  ;;  %v368_v10 = vld [vmem:[%s3856_s1] sm:$0xff] }
  0x1a   : > { %s3912_s28 = smov (!%p345_p13, %s344_s28), 35  ;;  %2445 = vmatpush.msra.mxu3 %v372_v2  ;;  %593 = vmatpush.msra.mxu1 %v2392_v3  ;;  %v2388_v11 = vld [vmem:[%s3856_s1 + $0x30] sm:$0xff]  ;;  %v2417_v15 = vld [vmem:[%s3856_s1 + $0x88] sm:$0xff]  ;;  %v2416_v16 = vld [vmem:[%s3856_s1 + $0x80] sm:$0xff] }
  0x1b   : > { %s2369_s14 = sshll.u32 %s3912_s28, 3  ;;  %441 = vmatpush.msra.mxu0 %v371_v4  ;;  %2446 = vmatpush.msra.mxu2 %v371_v4  ;;  %v858_v17 = vld [vmem:[%s3860_s5] sm:$0xff]  ;;  %v2415_v19 = vld [vmem:[%s3856_s1 + $0x78] sm:$0xff]  ;;  %v2414_v23 = vld [vmem:[%s3856_s1 + $0x70] sm:$0xff]  ;;  %s2368_s28 = sshll.u32 %s341_s25, 3 }
  0x1c   : > { %2447 = vmatpush.msra.mxu3 %v371_v4  ;;  %594 = vmatpush.msra.mxu1 %v2391_v5  ;;  %s2753_s26 = scalar_lea.vmem %s3855_s0, %s2369_s14  ;;  %v2413_v24 = vld [vmem:[%s3856_s1 + $0x68] sm:$0xff]  ;;  %v2412_v26 = vld [vmem:[%s3856_s1 + $0x60] sm:$0xff]  ;;  %v860_v30 = vld [vmem:[%s3860_s5 + $0x10] sm:$0xff]  ;;  %s343_s14 = scalar_lea.vmem [#allocation7], %s2368_s28 }
  0x1d   : > { %442 = vmatpush.msra.mxu0 %v370_v6  ;;  %2448 = vmatpush.msra.mxu2 %v370_v6  ;;  %v350_v12 = vld [vmem:[%s2753_s26] sm:$0xff]  ;;  %v2769_v14 = vld [vmem:[%s2753_s26 + $0x58] sm:$0xff]  ;;  %v351_v20 = vld [vmem:[%s2753_s26 + $0x8] sm:$0xff]  ;;  %s2288_s22 = sshll.u32 %s343_s14, 4  ;;  %s2562_s28 = scalar_lea.hbm %s3864_s9, 16  ;;  %s2289_s22 = int_to_ptr.vmem [resolvable:$true] %s2288_s22 }
  0x1e   : > { %2449 = vmatpush.msra.mxu3 %v370_v6  ;;  %595 = vmatpush.msra.mxu1 %v2390_v7  ;;  %v2766_v13 = vld [vmem:[%s2753_s26 + $0x40] sm:$0xff]  ;;  %v2791_v21 = vld [vmem:[%s2753_s26 + $0x48] sm:$0xff]  ;;  %v352_v27 = vld [vmem:[%s2753_s26 + $0x10] sm:$0xff] }
  0x1f   : > { %443 = vmatpush.msra.mxu0 %v369_v8  ;;  %2450 = vmatpush.msra.mxu2 %v369_v8  ;;  %v2794_v22 = vld [vmem:[%s2753_s26 + $0x60] sm:$0xff]  ;;  %v859_v25 = vld [vmem:[%s3860_s5 + $0x8] sm:$0xff]  ;;  %v2816_v28 = vld [vmem:[%s2753_s26 + $0x50] sm:$0xff] }
  0x20   : > { %2451 = vmatpush.msra.mxu3 %v369_v8  ;;  %596 = vmatpush.msra.mxu1 %v2389_v9  ;;  %v2819_v29 = vld [vmem:[%s2753_s26 + $0x68] sm:$0xff]  ;;  %v864_v31 = vld [vmem:[%s3860_s5 + $0x30] sm:$0xff]  ;;  %v353_v32 = vld [vmem:[%s2753_s26 + $0x18] sm:$0xff] }
  0x21   : > { %444 = vmatpush.msra.mxu0 %v368_v10  ;;  %2452 = vmatpush.msra.mxu2 %v368_v10  ;;  %v2835_v33 = vld [vmem:[%s2753_s26 + $0x70] sm:$0xff]  ;;  %v861_v34 = vld [vmem:[%s3860_s5 + $0x18] sm:$0xff]  ;;  %v867_v35 = vld [vmem:[%s3860_s5 + $0x48] sm:$0xff] }
  0x22   : > { %2453 = vmatpush.msra.mxu3 %v368_v10  ;;  %597 = vmatpush.msra.mxu1 %v2388_v11  ;;  %v354_v36 = vld [vmem:[%s2753_s26 + $0x20] sm:$0xff]  ;;  %v2850_v37 = vld [vmem:[%s2753_s26 + $0x78] sm:$0xff]  ;;  %v355_v40 = vld [vmem:[%s2753_s26 + $0x28] sm:$0xff] }
  0x23   : > { %2370 = vmatmul.msk.f32.vlgmr.msra.gmra.mxu0 %vm374_vm0, %v350_v12  ;;  %2378 = vmatmul.msk.f32.vlgmr.msra.gmra.mxu2 %vm374_vm0, %v2766_v13  ;;  %v865_v38 = vld [vmem:[%s3860_s5 + $0x38] sm:$0xff]  ;;  %v870_v39 = vld [vmem:[%s3860_s5 + $0x60] sm:$0xff]  ;;  %v868_v42 = vld [vmem:[%s3860_s5 + $0x50] sm:$0xff] }
  0x24   : > { %2381 = vmatmul.msk.f32.vlgmr.msra.gmra.mxu3 %vm374_vm0, %v2769_v14  ;;  %2394 = vmatmul.msk.f32.vlgmr.msra.gmra.mxu1 %vm374_vm0, %v350_v12  ;;  %v2865_v41 = vld [vmem:[%s2753_s26 + $0x80] sm:$0xff]  ;;  %v873_v43 = vld [vmem:[%s3860_s5 + $0x78] sm:$0xff]  ;;  %v356_v44 = vld [vmem:[%s2753_s26 + $0x30] sm:$0xff] }
  0x25   : > { %724 = vmatpush.msrb.mxu2 %v2417_v15  ;;  %2507 = vset.pattern.permute.xlu0 %v2613_v18  ;;  %v2880_v45 = vld [vmem:[%s2753_s26 + $0x88] sm:$0xff]  ;;  %v357_v47 = vld [vmem:[%s2753_s26 + $0x38] sm:$0xff]  ;;  %v862_v48 = vld [vmem:[%s3860_s5 + $0x20] sm:$0xff]  ;;  %s2439_s26 = sshll.u32 %s2685_s13, 3  ;;  %s2276_s13 = scalar_lea.sflag [#allocation6], %s341_s25 }
  0x26   : > { %936 = vperm.xlu0 %2507, %v858_v17   ;;  %2508 = vset.pattern.permute.xlu1 %v2613_v18  ;;  %v871_v46 = vld [vmem:[%s3860_s5 + $0x68] sm:$0xff]  ;;  %v874_v49 = vld [vmem:[%s3860_s5 + $0x80] sm:$0xff]  ;;  %v869_v52 = vld [vmem:[%s3860_s5 + $0x58] sm:$0xff]  ;;  %s2286_s21 = scalar_lea.hbm %s3864_s9, %s2439_s26 }
  0x27   : > { %725 = vmatpush.msrb.mxu2 %v2416_v16  ;;  %2509 = vset.pattern.permute.xlu2 %v2613_v18  ;;  %v863_v50 = vld [vmem:[%s3860_s5 + $0x28] sm:$0xff]  ;;  %v866_v51 = vld [vmem:[%s3860_s5 + $0x40] sm:$0xff]  ;;  %v872_v53 = vld [vmem:[%s3860_s5 + $0x70] sm:$0xff]  ;;  %s2290_s23 = sshll.u32 %s2286_s21, 4  ;;  %s2291_s23 = int_to_ptr.hbm [resolvable:$true] %s2290_s23 }
  0x28   : > { %946 = vperm.xlu1 %2508, %v860_v30   ;;  %956 = vperm.xlu2 %2509, %v862_v48   ;;  %v875_v54 = vld [vmem:[%s3860_s5 + $0x88] sm:$0xff]  ;;  %v1108_v55 = vld [vmem:[#allocation4 + $0xf0] sm:$0xff]  ;;  %v1109_v56 = vld [vmem:[#allocation4 + $0xf8] sm:$0xff]  ;;  %s2556_s24 = sshra.s32 %s2291_s23, 4  ;;  %s2557_s24 = int_to_ptr.hbm [resolvable:$true] %s2556_s24 }
  0x29   : > { %726 = vmatpush.msrb.mxu2 %v2415_v19  ;;  %v1427_v57 = vld [vmem:[#allocation4 + $0x1f0] sm:$0xff]  ;;  %1110 = vmatpush.msrb.mxu3 %v1108_v55  ;;  %v1428_v58 = vld [vmem:[#allocation4 + $0x1f8] sm:$0xff]  ;;  %v1106_v61 = vld [vmem:[#allocation4 + $0xe0] sm:$0xff]  ;;  %s2558_s27 = scalar_lea.hbm %s2557_s24, 8  ;;  %p2563_p3 = scmp.lt.s32.totalorder %s2557_s24, %s3864_s9 }
  0x2a   : > { %1181 = vmatpush.msrb.mxu0 %v1109_v56  ;;  %1429 = vmatpush.msrb.mxu1 %v1427_v57  ;;  %v1107_v62 = vld [vmem:[#allocation4 + $0xe8] sm:$0xff]  ;;  %v1425_v63 = vld [vmem:[#allocation4 + $0x1e0] sm:$0xff]  ;;  %v1104_v1 = vld [vmem:[#allocation4 + $0xd0] sm:$0xff]  ;;  %p2559_p0 = scmp.ne.s32.totalorder %s2557_s24, %s2558_s27  ;;  %p2564_p4 = scmp.lt.s32.totalorder %s2562_s28, %s2558_s27 }
  0x2b   : > { %2371 = vmatmul.msk.f32.gmra.mxu0 %vm374_vm0, %v351_v20  ;;  %2379 = vmatmul.msk.f32.gmra.mxu2 %vm374_vm0, %v2791_v21  ;;  %v1426_v0 = vld [vmem:[#allocation4 + $0x1e8] sm:$0xff]  ;;  %v1105_v2 = vld [vmem:[#allocation4 + $0xd8] sm:$0xff]  ;;  %v1423_v3 = vld [vmem:[#allocation4 + $0x1d0] sm:$0xff] }
  0x2c   : > { %2382 = vmatmul.msk.f32.gmra.mxu3 %vm374_vm0, %v2794_v22  ;;  %2395 = vmatmul.msk.f32.gmra.mxu1 %vm374_vm0, %v351_v20  ;;  %v1424_v4 = vld [vmem:[#allocation4 + $0x1d8] sm:$0xff]  ;;  %v1102_v5 = vld [vmem:[#allocation4 + $0xc0] sm:$0xff]  ;;  %v1103_v6 = vld [vmem:[#allocation4 + $0xc8] sm:$0xff]  ;;  %p2560_p1 = pnand %p2559_p0, %p2702_p5  ;;  %p2565_p7 = por %p2564_p4, %p2563_p3 }
  0x2d   : > { %727 = vmatpush.msrb.mxu2 %v2414_v23  ;;  %1111 = vmatpush.msrb.mxu3 %v1106_v61  ;;  %v1421_v7 = vld [vmem:[#allocation4 + $0x1c0] sm:$0xff]  ;;  %v1422_v8 = vld [vmem:[#allocation4 + $0x1c8] sm:$0xff]  ;;  %v1100_v9 = vld [vmem:[#allocation4 + $0xb0] sm:$0xff] }
  0x2e   : > { %941 = vperm.xlu0 %2507, %v859_v25   ;;  %1182 = vmatpush.msrb.mxu0 %v1107_v62  ;;  %v1101_v10 = vld [vmem:[#allocation4 + $0xb8] sm:$0xff]  ;;  %v1419_v11 = vld [vmem:[#allocation4 + $0x1b0] sm:$0xff]  ;;  %v1098_v15 = vld [vmem:[#allocation4 + $0xa0] sm:$0xff]  ;;  %p2561_p2 = pneg %p2560_p1 }
  0x2f   : > { %728 = vmatpush.msrb.mxu2 %v2413_v24  ;;  %1430 = vmatpush.msrb.mxu1 %v1425_v63  ;;  %v1099_v16 = vld [vmem:[#allocation4 + $0xa8] sm:$0xff]  ;;  %v1417_v17 = vld [vmem:[#allocation4 + $0x1a0] sm:$0xff]  ;;  %v1416_v23 = vld [vmem:[#allocation4 + $0x198] sm:$0xff] }
  0x30   : > { %951 = vperm.xlu1 %2508, %v861_v34   ;;  %961 = vperm.xlu2 %2509, %v863_v50   ;;  %v1418_v19 = vld [vmem:[#allocation4 + $0x1a8] sm:$0xff]  ;;  %v1094_v24 = vld [vmem:[#allocation4 + $0x80] sm:$0xff]  ;;  %v1411_v30 = vld [vmem:[#allocation4 + $0x170] sm:$0xff]  ;;  %p2566_p8 = pnand %p2565_p7, %p2561_p2 }
  0x31   : > { %729 = vmatpush.msrb.mxu2 %v2412_v26  ;;  %1112 = vmatpush.msrb.mxu3 %v1104_v1  ;;  %v1095_v25 = vld [vmem:[#allocation4 + $0x88] sm:$0xff]  ;;  %v1413_v26 = vld [vmem:[#allocation4 + $0x180] sm:$0xff]  ;;  %v1084_v50 = vld [vmem:[#allocation4 + $0x30] sm:$0xff] }
  0x32   : > { %1183 = vmatpush.msrb.mxu0 %v1105_v2  ;;  %1431 = vmatpush.msrb.mxu1 %v1423_v3  ;;  %v1090_v34 = vld [vmem:[#allocation4 + $0x60] sm:$0xff]  ;;  %v1083_v56 = vld [vmem:[#allocation4 + $0x28] sm:$0xff]  ;;  %v1080_v61 = vld [vmem:[#allocation4 + $0x10] sm:$0xff] }
  0x33   : > { %2372 = vmatmul.msk.f32.gmra.mxu0 %vm374_vm0, %v352_v27  ;;  %2380 = vmatmul.msk.f32.gmra.mxu2 %vm374_vm0, %v2816_v28  ;;  %v1082_v55 = vld [vmem:[#allocation4 + $0x20] sm:$0xff]  ;;  %v1081_v62 = vld [vmem:[#allocation4 + $0x18] sm:$0xff]  ;;  %v1399_v63 = vld [vmem:[#allocation4 + $0x110] sm:$0xff] }
  0x34   : > { %2383 = vmatmul.msk.f32.gmra.mxu3 %vm374_vm0, %v2819_v29  ;;  %2396 = vmatmul.msk.f32.gmra.mxu1 %vm374_vm0, %v352_v27  ;;  %v1401_v57 = vld [vmem:[#allocation4 + $0x120] sm:$0xff]  ;;  %v1079_v3 = vld [vmem:[#allocation4 + $0x8] sm:$0xff] }
  0x35   : > { %1500 = vmatpush.msra.mxu2 %v1428_v58  ;;  %1113 = vmatpush.msrb.mxu3 %v1102_v5  ;;  %v1402_v58 = vld [vmem:[#allocation4 + $0x128] sm:$0xff]  ;;  %v1078_v1 = vld [vmem:[#allocation4] sm:$0xff] }
  0x36   : > { %966 = vperm.xlu0 %2507, %v864_v31   ;;  %1184 = vmatpush.msrb.mxu0 %v1103_v6  ;;  %v1398_v5 = vld [vmem:[#allocation4 + $0x108] sm:$0xff] }
  0x37   : > { %1501 = vmatpush.msra.mxu2 %v1426_v0  ;;  %1432 = vmatpush.msrb.mxu1 %v1421_v7  ;;  %v1400_v0 = vld [vmem:[#allocation4 + $0x118] sm:$0xff] }
  0x38   : > { %971 = vperm.xlu1 %2508, %v865_v38   ;;  %976 = vperm.xlu2 %2509, %v866_v51   ;;  %v1088_v38 = vld [vmem:[#allocation4 + $0x50] sm:$0xff]  ;;  %v1085_v51 = vld [vmem:[#allocation4 + $0x38] sm:$0xff] }
  0x39   : > { %1502 = vmatpush.msra.mxu2 %v1424_v4  ;;  %1114 = vmatpush.msrb.mxu3 %v1100_v9  ;;  %v1397_v4 = vld [vmem:[#allocation4 + $0x100] sm:$0xff] }
  0x3a   : > { %1185 = vmatpush.msrb.mxu0 %v1101_v10  ;;  %1433 = vmatpush.msrb.mxu1 %v1419_v11 }
  0x3b   : > { %2373 = vmatmul.msk.f32.gmra.mxu0 %vm374_vm0, %v353_v32  ;;  %2418 = vmatmul.msk.f32.vlgmr.msrb.gmra.mxu2 %vm374_vm0, %v350_v12  ;;  %v1420_v12 = vld [vmem:[#allocation4 + $0x1b8] sm:$0xff] }
  0x3c   : > { %2384 = vmatmul.msk.f32.gmra.mxu3 %vm374_vm0, %v2835_v33  ;;  %2397 = vmatmul.msk.f32.gmra.mxu1 %vm374_vm0, %v353_v32 }
  0x3d   : > { %1503 = vmatpush.msra.mxu2 %v1422_v8  ;;  %1115 = vmatpush.msrb.mxu3 %v1098_v15 }
  0x3e   : > { %981 = vperm.xlu0 %2507, %v867_v35   ;;  %1186 = vmatpush.msrb.mxu0 %v1099_v16  ;;  %v1091_v35 = vld [vmem:[#allocation4 + $0x68] sm:$0xff] }
  0x3f   : > { %1504 = vmatpush.msra.mxu2 %v1420_v12  ;;  %1434 = vmatpush.msrb.mxu1 %v1417_v17 }
  0x40   : > { %986 = vperm.xlu1 %2508, %v868_v42   ;;  %991 = vperm.xlu2 %2509, %v869_v52   ;;  %v1407_v42 = vld [vmem:[#allocation4 + $0x150] sm:$0xff] }
  0x41   : > { %1505 = vmatpush.msra.mxu2 %v1418_v19 }
  0x43   : > { %2374 = vmatmul.msk.f32.gmra.mxu0 %vm374_vm0, %v354_v36  ;;  %2419 = vmatmul.msk.f32.gmra.mxu2 %vm374_vm0, %v351_v20  ;;  %v1096_v20 = vld [vmem:[#allocation4 + $0x90] sm:$0xff] }
  0x44   : > { %2385 = vmatmul.msk.f32.gmra.mxu3 %vm374_vm0, %v2850_v37  ;;  %2398 = vmatmul.msk.f32.gmra.mxu1 %vm374_vm0, %v354_v36 }
  0x45   : > { %1116 = vmatpush.msrb.mxu3 %v1096_v20  ;;  %1506 = vmatpush.msra.mxu2 %v1416_v23 }
  0x46   : > { %996 = vperm.xlu0 %2507, %v870_v39   ;;  %v1089_v39 = vld [vmem:[#allocation4 + $0x58] sm:$0xff] }
  0x47   : > { %1117 = vmatpush.msrb.mxu3 %v1094_v24 }
  0x48   : > { %1001 = vperm.xlu1 %2508, %v871_v46   ;;  %1006 = vperm.xlu2 %2509, %v872_v53   ;;  %v1087_v46 = vld [vmem:[#allocation4 + $0x48] sm:$0xff]  ;;  %v1403_v53 = vld [vmem:[#allocation4 + $0x130] sm:$0xff] }
  0x4b   : > { %2375 = vmatmul.msk.f32.gmra.mxu0 %vm374_vm0, %v355_v40  ;;  %2420 = vmatmul.msk.f32.gmra.mxu2 %vm374_vm0, %v352_v27  ;;  %v1414_v27 = vld [vmem:[#allocation4 + $0x188] sm:$0xff] }
  0x4c   : > { %2386 = vmatmul.msk.f32.gmra.mxu3 %vm374_vm0, %v2865_v41  ;;  %2399 = vmatmul.msk.f32.gmra.mxu1 %vm374_vm0, %v355_v40 }
  0x4d   : > { %1507 = vmatpush.msra.mxu2 %v1414_v27 }
  0x4e   : > { %1011 = vperm.xlu0 %2507, %v873_v43   ;;  %v1408_v43 = vld [vmem:[#allocation4 + $0x158] sm:$0xff] }
  0x50   : > { %1016 = vperm.xlu1 %2508, %v874_v49   ;;  %1021 = vperm.xlu2 %2509, %v875_v54   ;;  %v1406_v49 = vld [vmem:[#allocation4 + $0x148] sm:$0xff]  ;;  %v1404_v54 = vld [vmem:[#allocation4 + $0x138] sm:$0xff] }
  0x53   : > { %2376 = vmatmul.msk.f32.gmra.mxu0 %vm374_vm0, %v356_v44  ;;  %2421 = vmatmul.msk.f32.gmra.mxu2 %vm374_vm0, %v353_v32  ;;  %v1412_v32 = vld [vmem:[#allocation4 + $0x178] sm:$0xff] }
  0x54   : > { %2387 = vmatmul.msk.f32.gmra.mxu3 %vm374_vm0, %v2880_v45  ;;  %2400 = vmatmul.msk.f32.gmra.mxu1 %vm374_vm0, %v356_v44 }
  0x55   : > { %1508 = vmatpush.msra.mxu2 %v1412_v32 }
  0x5b   : > { %2377 = vmatmul.msk.f32.gmra.mxu0 %vm374_vm0, %v357_v47  ;;  %2422 = vmatmul.msk.f32.gmra.mxu2 %vm374_vm0, %v354_v36  ;;  %v1409_v36 = vld [vmem:[#allocation4 + $0x160] sm:$0xff] }
  0x5c   : > { %2401 = vmatmul.msk.f32.gmra.mxu1 %vm374_vm0, %v357_v47 }
  0x63   : > { %2423 = vmatmul.msk.f32.gmra.mxu2 %vm374_vm0, %v355_v40 }
  0x64   : > { %2402 = vmatmul.msk.f32.gmra.mxu1 %vm374_vm0, %v2766_v13 }
  0x6b   : > { %2424 = vmatmul.msk.f32.gmra.mxu2 %vm374_vm0, %v356_v44  ;;  %v1086_v44 = vld [vmem:[#allocation4 + $0x40] sm:$0xff] }
  0x6c   : > { %2403 = vmatmul.msk.f32.gmra.mxu1 %vm374_vm0, %v2791_v21 }
  0x73   : > { %2425 = vmatmul.msk.f32.gmra.mxu2 %vm374_vm0, %v357_v47  ;;  %v1405_v47 = vld [vmem:[#allocation4 + $0x140] sm:$0xff] }
  0x74   : > { %2404 = vmatmul.msk.f32.gmra.mxu1 %vm374_vm0, %v2816_v28 }
  0x7b   : > { %2426 = vmatmul.msk.f32.gmra.mxu2 %vm374_vm0, %v2766_v13 }
  0x7c   : > { %2405 = vmatmul.msk.f32.gmra.mxu1 %vm374_vm0, %v2769_v14 }
  0x83   : > { %2427 = vmatmul.msk.f32.gmra.mxu2 %vm374_vm0, %v2791_v21  ;;  %v1097_v21 = vld [vmem:[#allocation4 + $0x98] sm:$0xff] }
  0x84   : > { %2406 = vmatmul.msk.f32.gmra.mxu1 %vm374_vm0, %v2794_v22  ;;  %1187 = vmatpush.msrb.mxu0 %v1097_v21 }
  0x86   : > { %1188 = vmatpush.msrb.mxu0 %v1095_v25 }
  0x8b   : > { %2428 = vmatmul.msk.f32.gmra.mxu2 %vm374_vm0, %v2816_v28  ;;  %v1092_v28 = vld [vmem:[#allocation4 + $0x70] sm:$0xff] }
  0x8c   : > { %2407 = vmatmul.msk.f32.gmra.mxu1 %vm374_vm0, %v2819_v29  ;;  %1118 = vmatpush.msrb.mxu3 %v1092_v28 }
  0x8e   : > { %1119 = vmatpush.msrb.mxu3 %v1090_v34 }
  0x90   : > { %1120 = vmatpush.msrb.mxu3 %v1088_v38 }
  0x92   : > { %1121 = vmatpush.msrb.mxu3 %v1086_v44 }
  0x93   : > { %2429 = vmatmul.msk.f32.gmra.mxu2 %vm374_vm0, %v2769_v14 }
  0x94   : > { %2408 = vmatmul.msk.f32.gmra.mxu1 %vm374_vm0, %v2835_v33  ;;  %1122 = vmatpush.msrb.mxu3 %v1084_v50 }
  0x96   : > { %1123 = vmatpush.msrb.mxu3 %v1082_v55 }
  0x98   : > { %1124 = vmatpush.msrb.mxu3 %v1080_v61 }
  0x9a   : > { %1125 = vmatpush.msrb.mxu3 %v1078_v1 }
  0x9b   : > { %2430 = vmatmul.msk.f32.gmra.mxu2 %vm374_vm0, %v2794_v22  ;;  %v1415_v22 = vld [vmem:[#allocation4 + $0x190] sm:$0xff] }
  0x9c   : > { %2409 = vmatmul.msk.f32.gmra.mxu1 %vm374_vm0, %v2850_v37 }
  0x9d   : > { %1435 = vmatpush.msrb.mxu1 %v1415_v22 }
  0x9f   : > { %1436 = vmatpush.msrb.mxu1 %v1413_v26 }
  0xa0   : > { %v2972_v48 = vpop.f32.mrf.mxu0 }
  0xa1   : > { %v2960_v18 = vpop.f32.mrf.mxu1  ;;  %1437 = vmatpush.msrb.mxu1 %v1411_v30  ;;  %v500_v16 = vrot.slane %v2972_v48, 7  ;;  %v3003_v30 = vld [vmem:[%s3857_s2] ss:$0 sm:$0xff] }
  0xa3   : > { %2431 = vmatmul.msk.f32.gmra.mxu2 %vm374_vm0, %v2819_v29  ;;  %v1093_v29 = vld [vmem:[#allocation4 + $0x78] sm:$0xff]  ;;  %1438 = vmatpush.msrb.mxu1 %v1409_v36 }
  0xa4   : > { %2410 = vmatmul.msk.f32.gmra.mxu1 %vm374_vm0, %v2865_v41  ;;  %1189 = vmatpush.msrb.mxu0 %v1093_v29 }
  0xa5   : > { %1439 = vmatpush.msrb.mxu1 %v1407_v42 }
  0xa6   : > { %v2948_v59 = vpop.f32.mrf.mxu2  ;;  %1190 = vmatpush.msrb.mxu0 %v1091_v35 }
  0xa7   : > { %v2950_v60 = vpop.f32.mrf.mxu3  ;;  %1440 = vmatpush.msrb.mxu1 %v1405_v47 }
  0xa8   : > { %1191 = vmatpush.msrb.mxu0 %v1089_v39  ;;  %v449_v7 = vpop.f32.mrf.mxu0 }
  0xa9   : > { %v2968_v40 = vpop.f32.mrf.mxu1  ;;  %1441 = vmatpush.msrb.mxu1 %v1403_v53  ;;  %v501_v17 = vrot.slane %v449_v7, 7 }
  0xaa   : > { %1192 = vmatpush.msrb.mxu0 %v1087_v46 }
  0xab   : > { %2432 = vmatmul.msk.f32.gmra.mxu2 %vm374_vm0, %v2835_v33  ;;  %1442 = vmatpush.msrb.mxu1 %v1401_v57 }
  0xac   : > { %2411 = vmatmul.msk.f32.gmra.mxu1 %vm374_vm0, %v2880_v45  ;;  %1193 = vmatpush.msrb.mxu0 %v1085_v51 }
  0xad   : > { %1443 = vmatpush.msrb.mxu1 %v1399_v63 }
  0xae   : > { %v2956_v13 = vpop.f32.mrf.mxu2  ;;  %1194 = vmatpush.msrb.mxu0 %v1083_v56 }
  0xaf   : > { %v2958_v14 = vpop.f32.mrf.mxu3  ;;  %1444 = vmatpush.msrb.mxu1 %v1397_v4 }
  0xb0   : > { %1195 = vmatpush.msrb.mxu0 %v1081_v62  ;;  %v452_v12 = vpop.f32.mrf.mxu0 }
  0xb1   : > { %v605_v2 = vpop.f32.mrf.mxu1  ;;  %v502_v34 = vrot.slane %v452_v12, 7 }
  0xb2   : > { %1196 = vmatpush.msrb.mxu0 %v1079_v3 }
  0xb3   : > { %2433 = vmatmul.msk.f32.gmra.mxu2 %vm374_vm0, %v2850_v37  ;;  %v1410_v37 = vld [vmem:[#allocation4 + $0x168] sm:$0xff] }
  0xb4   : > { %1509 = vmatpush.msra.mxu2 %v1410_v37 }
  0xb6   : > { %v2964_v31 = vpop.f32.mrf.mxu2  ;;  %1510 = vmatpush.msra.mxu2 %v1408_v43  ;;  %v937_v43 = vpop.permute.xlu0 %936 }
  0xb7   : > { %v2966_v33 = vpop.f32.mrf.mxu3 }
  0xb8   : > { %1511 = vmatpush.msra.mxu2 %v1406_v49  ;;  %v455_v29 = vpop.f32.mrf.mxu0 }
  0xb9   : > { %v608_v9 = vpop.f32.mrf.mxu1  ;;  %v503_v50 = vrot.slane %v455_v29, 7 }
  0xba   : > { %1512 = vmatpush.msra.mxu2 %v1404_v54 }
  0xbb   : > { %2434 = vmatmul.msk.f32.gmra.mxu2 %vm374_vm0, %v2865_v41 }
  0xbc   : > { %1513 = vmatpush.msra.mxu2 %v1402_v58 }
  0xbe   : > { %v2974_v52 = vpop.f32.mrf.mxu2  ;;  %1514 = vmatpush.msra.mxu2 %v1400_v0  ;;  %v942_v61 = vpop.permute.xlu0 %941 }
  0xbf   : > { %v2976_v41 = vpop.f32.mrf.mxu3  ;;  %v785_v22 = vrot.slane %v2974_v52, 1 }
  0xc0   : > { %1515 = vmatpush.msra.mxu2 %v1398_v5  ;;  %v458_v53 = vpop.f32.mrf.mxu0 }
  0xc1   : > { %v611_v23 = vpop.f32.mrf.mxu1  ;;  %v504_v1 = vrot.slane %v458_v53, 7 }
  0xc3   : > { %2435 = vmatmul.msk.f32.gmra.mxu2 %vm374_vm0, %v2880_v45  ;;  %v518_v45 = vlaneseq }
  0xc5   : > { %v2984_v15 = vshrl.u32 %v518_v45, 7 }
  0xc6   : > { %v734_v6 = vpop.f32.mrf.mxu2 }
  0xc7   : > { %v2980_v8 = vpop.f32.mrf.mxu3  ;;  %vm520_vm1 = vcmp.lt.s32.totalorder %v2984_v15, 1  ;;  %v786_v24 = vrot.slane %v734_v6, 1  ;;  %vm803_vm2 = vcmp.lt.s32.totalorder %v2984_v15, 7 }
  0xc8   : > { %v537_v20 = vsel %vm520_vm1, %v500_v16, %v501_v17  ;;  %v536_v42 = vsel %vm520_vm1, %v501_v17, %v502_v34  ;;  %v535_v57 = vsel %vm520_vm1, %v502_v34, %v503_v50  ;;  %v461_v5 = vpop.f32.mrf.mxu0  ;;  %v534_v45 = vsel %vm520_vm1, %v503_v50, %v504_v1 }
  0xc9   : > { %v654_v28 = vadd.f32 %v2968_v40, %v537_v20  ;;  %v820_v35 = vsel %vm803_vm2, %v785_v22, %v786_v24  ;;  %v614_v46 = vpop.f32.mrf.mxu1  ;;  %v655_v47 = vadd.f32 %v605_v2, %v536_v42  ;;  %v656_v62 = vadd.f32 %v608_v9, %v535_v57  ;;  %v947_v9 = vpop.permute.xlu1 %946 }
  0xca   : > { %v657_v12 = vadd.f32 %v611_v23, %v534_v45  ;;  %v505_v20 = vrot.slane %v461_v5, 7 }
  0xce   : > { %v737_v10 = vpop.f32.mrf.mxu2 }
  0xcf   : > { %v2982_v11 = vpop.f32.mrf.mxu3  ;;  %v787_v25 = vrot.slane %v737_v10, 1 }
  0xd0   : > { %v464_v29 = vpop.f32.mrf.mxu0 }
  0xd1   : > { %v819_v36 = vsel %vm803_vm2, %v786_v24, %v787_v25  ;;  %v617_v2 = vpop.f32.mrf.mxu1 }
  0xd2   : > { %v823_v39 = vadd.f32 %v819_v36, %v654_v28  ;;  %v533_v28 = vsel %vm520_vm1, %v504_v1, %v505_v20 }
  0xd4   : > { %v899_v48 = vadd.f32 %v3003_v30, %v823_v39 }
  0xd6   : > { %v740_v19 = vpop.f32.mrf.mxu2  ;;  %v917_v55 = vmax.f32 %v899_v48, 0.0 }
  0xd7   : > { %v2990_v21 = vpop.f32.mrf.mxu3  ;;  %v788_v44 = vrot.slane %v740_v19, 1 }
  0xd8   : > { %v517_v26 = vrot.slane %v2990_v21, 7  ;;  %v3026_v63 = vmul.f32 %v942_v61, %v917_v55  ;;  %v467_v50 = vpop.f32.mrf.mxu0 }
  0xd9   : > { %v818_v51 = vsel %vm803_vm2, %v787_v25, %v788_v44  ;;  %v620_v24 = vpop.f32.mrf.mxu1  ;;  %v507_v55 = vrot.slane %v467_v50, 7 }
  0xda   : > { %v538_v27 = vsel %vm520_vm1, %v517_v26, %v500_v16  ;;  %v824_v56 = vadd.f32 %v818_v51, %v655_v47 }
  0xdb   : > { %v653_v32 = vadd.f32 %v2960_v18, %v538_v27 }
  0xdc   : > { %v900_v0 = vadd.f32 %v3003_v30, %v824_v56 }
  0xdd   : > { %v822_v37 = vadd.f32 %v820_v35, %v653_v32  ;;  %v952_v32 = vpop.permute.xlu1 %951  ;;  %v658_v35 = vadd.f32 %v614_v46, %v533_v28 }
  0xde   : > { %v743_v38 = vpop.f32.mrf.mxu2  ;;  %v918_v6 = vmax.f32 %v900_v0, 0.0 }
  0xdf   : > { %v898_v40 = vadd.f32 %v3003_v30, %v822_v37  ;;  %v789_v58 = vrot.slane %v743_v38, 1  ;;  %v506_v38 = vrot.slane %v464_v29, 7  ;;  %v509_v29 = vrot.slane %v2956_v13, 7 }
  0xe0   : > { %v3037_v16 = vmul.f32 %v947_v9, %v918_v6 }
  0xe1   : > { %v916_v18 = vmax.f32 %v898_v40, 0.0  ;;  %v817_v3 = vsel %vm803_vm2, %v788_v44, %v789_v58  ;;  %v532_v44 = vsel %vm520_vm1, %v505_v20, %v506_v38  ;;  %v623_v46 = vpop.f32.mrf.mxu1  ;;  %v531_v61 = vsel %vm520_vm1, %v506_v38, %v507_v55 }
  0xe2   : > { %v825_v7 = vadd.f32 %v817_v3, %v656_v62  ;;  %v659_v48 = vadd.f32 %v617_v2, %v532_v44  ;;  %v660_v2 = vadd.f32 %v620_v24, %v531_v61 }
  0xe3   : > { %v3016_v49 = vmul.f32 %v937_v43, %v916_v18  ;;  %v957_v18 = vpop.permute.xlu2 %956 }
  0xe4   : > { %v901_v17 = vadd.f32 %v3003_v30, %v825_v7 }
  0xe5   : > { %1126 = vmatmul.f32.vlgmr.msrb.gmra.mxu3 %v3016_v49  ;;  %1197 = vmatmul.f32.vlgmr.msrb.gmra.mxu0 %v3016_v49 }
  0xe6   : > { %1445 = vmatmul.f32.vlgmr.msrb.gmra.mxu1 %v3016_v49  ;;  %1516 = vmatmul.f32.vlgmr.msra.gmra.mxu2 %v3016_v49  ;;  %v746_v54 = vpop.f32.mrf.mxu2  ;;  %v919_v27 = vmax.f32 %v901_v17, 0.0 }
  0xe7   : > { %v790_v10 = vrot.slane %v746_v54, 1 }
  0xe8   : > { %v3048_v36 = vmul.f32 %v952_v32, %v919_v27 }
  0xe9   : > { %v816_v19 = vsel %vm803_vm2, %v789_v58, %v790_v10  ;;  %v626_v1 = vpop.f32.mrf.mxu1 }
  0xea   : > { %v826_v23 = vadd.f32 %v816_v19, %v657_v12  ;;  %v967_v12 = vpop.permute.xlu0 %966 }
  0xeb   : > { %v962_v0 = vpop.permute.xlu2 %961 }
  0xec   : > { %v902_v37 = vadd.f32 %v3003_v30, %v826_v23 }
  0xed   : > { %1129 = vmatmul.f32.gmra.mxu3 %v3026_v63  ;;  %1200 = vmatmul.f32.gmra.mxu0 %v3026_v63 }
  0xee   : > { %1448 = vmatmul.f32.gmra.mxu1 %v3026_v63  ;;  %1519 = vmatmul.f32.gmra.mxu2 %v3026_v63  ;;  %v749_v4 = vpop.f32.mrf.mxu2  ;;  %v920_v42 = vmax.f32 %v902_v37, 0.0 }
  0xef   : > { %v791_v34 = vrot.slane %v749_v4, 1 }
  0xf0   : > { %v3059_v51 = vmul.f32 %v957_v18, %v920_v42 }
  0xf1   : > { %v815_v39 = vsel %vm803_vm2, %v790_v10, %v791_v34  ;;  %v508_v10 = vrot.slane %v2948_v59, 7  ;;  %v629_v24 = vpop.f32.mrf.mxu1 }
  0xf2   : > { %v827_v43 = vadd.f32 %v815_v39, %v658_v35 }
  0xf3   : > { %v530_v20 = vsel %vm520_vm1, %v507_v55, %v508_v10  ;;  %v529_v38 = vsel %vm520_vm1, %v508_v10, %v509_v29 }
  0xf4   : > { %v903_v53 = vadd.f32 %v3003_v30, %v827_v43  ;;  %v661_v27 = vadd.f32 %v623_v46, %v530_v20  ;;  %v510_v46 = vrot.slane %v2964_v31, 7 }
  0xf5   : > { %1132 = vmatmul.f32.gmra.mxu3 %v3037_v16  ;;  %1203 = vmatmul.f32.gmra.mxu0 %v3037_v16 }
  0xf6   : > { %1451 = vmatmul.f32.gmra.mxu1 %v3037_v16  ;;  %1522 = vmatmul.f32.gmra.mxu2 %v3037_v16  ;;  %v752_v25 = vpop.f32.mrf.mxu2  ;;  %v921_v57 = vmax.f32 %v903_v53, 0.0  ;;  %v528_v53 = vsel %vm520_vm1, %v509_v29, %v510_v46 }
  0xf7   : > { %v792_v47 = vrot.slane %v752_v25, 1  ;;  %v663_v55 = vadd.f32 %v629_v24, %v528_v53 }
  0xf8   : > { %v3070_v3 = vmul.f32 %v962_v0, %v921_v57  ;;  %v982_v0 = vpop.permute.xlu0 %981 }
  0xf9   : > { %v814_v54 = vsel %vm803_vm2, %v791_v34, %v792_v47  ;;  %v972_v34 = vpop.permute.xlu1 %971  ;;  %v632_v42 = vpop.f32.mrf.mxu1 }
  0xfa   : > { %v828_v58 = vadd.f32 %v814_v54, %v659_v48 }
  0xfc   : > { %v904_v4 = vadd.f32 %v3003_v30, %v828_v58 }
  0xfd   : > { %1135 = vmatmul.f32.gmra.mxu3 %v3048_v36  ;;  %1206 = vmatmul.f32.gmra.mxu0 %v3048_v36 }
  0xfe   : > { %1454 = vmatmul.f32.gmra.mxu1 %v3048_v36  ;;  %1525 = vmatmul.f32.gmra.mxu2 %v3048_v36  ;;  %v755_v40 = vpop.f32.mrf.mxu2  ;;  %v922_v7 = vmax.f32 %v904_v4, 0.0 }
  0xff   : > { %v793_v62 = vrot.slane %v755_v40, 1  ;;  %v662_v40 = vadd.f32 %v626_v1, %v529_v38 }
 0x100   : > { %v3080_v17 = vmul.f32 %v967_v12, %v922_v7 }
 0x101   : > { %v813_v5 = vsel %vm803_vm2, %v792_v47, %v793_v62  ;;  %v977_v47 = vpop.permute.xlu2 %976  ;;  %v635_v58 = vpop.f32.mrf.mxu1 }
 0x102   : > { %v829_v45 = vadd.f32 %v813_v5, %v660_v2  ;;  %v987_v12 = vpop.permute.xlu1 %986 }
 0x104   : > { %v905_v19 = vadd.f32 %v3003_v30, %v829_v45 }
 0x105   : > { %1138 = vmatmul.f32.gmra.mxu3 %v3059_v51  ;;  %1209 = vmatmul.f32.gmra.mxu0 %v3059_v51 }
 0x106   : > { %1457 = vmatmul.f32.gmra.mxu1 %v3059_v51  ;;  %1528 = vmatmul.f32.gmra.mxu2 %v3059_v51  ;;  %v758_v56 = vpop.f32.mrf.mxu2  ;;  %v923_v23 = vmax.f32 %v905_v19, 0.0 }
 0x107   : > { %v794_v9 = vrot.slane %v758_v56, 1 }
 0x108   : > { %v3092_v35 = vmul.f32 %v972_v34, %v923_v23  ;;  %v1711_v23 = vld [vmem:[#allocation4 + $0x2f8] sm:$0xff]  ;;  %v1709_v34 = vld [vmem:[#allocation4 + $0x2e8] sm:$0xff] }
 0x109   : > { %v812_v25 = vsel %vm803_vm2, %v793_v62, %v794_v9  ;;  %v511_v62 = vrot.slane %v2950_v60, 7  ;;  %v638_v19 = vpop.f32.mrf.mxu1  ;;  %1783 = vmatpush.msra.mxu0 %v1711_v23 }
 0x10a   : > { %v830_v28 = vadd.f32 %v812_v25, %v661_v27  ;;  %v1002_v23 = vpop.permute.xlu1 %1001 }
 0x10b   : > { %v527_v4 = vsel %vm520_vm1, %v510_v46, %v511_v62  ;;  %1784 = vmatpush.msra.mxu0 %v1709_v34 }
 0x10c   : > { %v906_v37 = vadd.f32 %v3003_v30, %v830_v28  ;;  %v1708_v28 = vld [vmem:[#allocation4 + $0x2e0] sm:$0xff] }
 0x10d   : > { %1141 = vmatmul.f32.gmra.mxu3 %v3070_v3  ;;  %1212 = vmatmul.f32.gmra.mxu0 %v3070_v3 }
 0x10e   : > { %1460 = vmatmul.f32.gmra.mxu1 %v3070_v3  ;;  %1531 = vmatmul.f32.gmra.mxu2 %v3070_v3  ;;  %v761_v6 = vpop.f32.mrf.mxu2  ;;  %v924_v43 = vmax.f32 %v906_v37, 0.0  ;;  %v513_v37 = vrot.slane %v2966_v33, 7 }
 0x10f   : > { %v795_v32 = vrot.slane %v761_v6, 1  ;;  %v664_v6 = vadd.f32 %v632_v42, %v527_v4 }
 0x110   : > { %v3104_v48 = vmul.f32 %v977_v47, %v924_v43  ;;  %v1704_v47 = vld [vmem:[#allocation4 + $0x2c0] sm:$0xff] }
 0x111   : > { %v811_v39 = vsel %vm803_vm2, %v794_v9, %v795_v32  ;;  %v512_v9 = vrot.slane %v2958_v14, 7  ;;  %v1710_v14 = vld [vmem:[#allocation4 + $0x2f0] sm:$0xff]  ;;  %v641_v46 = vpop.f32.mrf.mxu1 }
 0x112   : > { %v831_v44 = vadd.f32 %v811_v39, %v662_v40  ;;  %1712 = vmatpush.msra.mxu3 %v1710_v14  ;;  %v1706_v39 = vld [vmem:[#allocation4 + $0x2d0] sm:$0xff]  ;;  %v1707_v40 = vld [vmem:[#allocation4 + $0x2d8] sm:$0xff] }
 0x113   : > { %v526_v25 = vsel %vm520_vm1, %v511_v62, %v512_v9  ;;  %1785 = vmatpush.msra.mxu0 %v1707_v40  ;;  %v1701_v62 = vld [vmem:[#allocation4 + $0x2a8] sm:$0xff]  ;;  %v1695_v14 = vld [vmem:[#allocation4 + $0x278] sm:$0xff]  ;;  %v1690_v40 = vld [vmem:[#allocation4 + $0x250] sm:$0xff] }
 0x114   : > { %v907_v50 = vadd.f32 %v3003_v30, %v831_v44  ;;  %1713 = vmatpush.msra.mxu3 %v1708_v28 }
 0x115   : > { %1144 = vmatmul.f32.gmra.mxu3 %v3080_v17  ;;  %1215 = vmatmul.f32.gmra.mxu0 %v3080_v17 }
 0x116   : > { %1463 = vmatmul.f32.gmra.mxu1 %v3080_v17  ;;  %1534 = vmatmul.f32.gmra.mxu2 %v3080_v17  ;;  %v764_v59 = vpop.f32.mrf.mxu2  ;;  %v925_v56 = vmax.f32 %v907_v50, 0.0  ;;  %v1705_v50 = vld [vmem:[#allocation4 + $0x2c8] sm:$0xff] }
 0x117   : > { %v796_v18 = vrot.slane %v764_v59, 1  ;;  %v665_v59 = vadd.f32 %v635_v58, %v526_v25  ;;  %1714 = vmatpush.msra.mxu3 %v1706_v39  ;;  %1786 = vmatpush.msra.mxu0 %v1705_v50  ;;  %v515_v25 = vrot.slane %v2980_v8, 7  ;;  %v1693_v8 = vld [vmem:[#allocation4 + $0x268] sm:$0xff] }
 0x118   : > { %v3116_v1 = vmul.f32 %v982_v0, %v925_v56  ;;  %v997_v0 = vpop.permute.xlu0 %996  ;;  %v1689_v50 = vld [vmem:[#allocation4 + $0x248] sm:$0xff] }
 0x119   : > { %v810_v54 = vsel %vm803_vm2, %v795_v32, %v796_v18  ;;  %1715 = vmatpush.msra.mxu3 %v1704_v47  ;;  %v1688_v47 = vld [vmem:[#allocation4 + $0x240] sm:$0xff] }
 0x11a   : > { %v832_v57 = vadd.f32 %v810_v54, %v663_v55  ;;  %v1702_v54 = vld [vmem:[#allocation4 + $0x2b0] sm:$0xff]  ;;  %v1703_v55 = vld [vmem:[#allocation4 + $0x2b8] sm:$0xff] }
 0x11b   : > { %1716 = vmatpush.msra.mxu3 %v1702_v54  ;;  %1787 = vmatpush.msra.mxu0 %v1703_v55 }
 0x11c   : > { %v908_v2 = vadd.f32 %v3003_v30, %v832_v57  ;;  %v514_v57 = vrot.slane %v2976_v41, 7 }
 0x11d   : > { %1147 = vmatmul.f32.gmra.mxu3 %v3092_v35  ;;  %1218 = vmatmul.f32.gmra.mxu0 %v3092_v35 }
 0x11e   : > { %1466 = vmatmul.f32.gmra.mxu1 %v3092_v35  ;;  %1537 = vmatmul.f32.gmra.mxu2 %v3092_v35  ;;  %v767_v13 = vpop.f32.mrf.mxu2  ;;  %v926_v60 = vmax.f32 %v908_v2, 0.0 }
 0x11f   : > { %v797_v61 = vrot.slane %v767_v13, 1  ;;  %v992_v13 = vpop.permute.xlu2 %991  ;;  %1788 = vmatpush.msra.mxu0 %v1701_v62  ;;  %v1685_v62 = vld [vmem:[#allocation4 + $0x228] sm:$0xff] }
 0x120   : > { %v3130_v20 = vmul.f32 %v987_v12, %v926_v60  ;;  %v1698_v60 = vld [vmem:[#allocation4 + $0x290] sm:$0xff]  ;;  %v1697_v12 = vld [vmem:[#allocation4 + $0x288] sm:$0xff] }
 0x121   : > { %v809_v5 = vsel %vm803_vm2, %v796_v18, %v797_v61  ;;  %v525_v18 = vsel %vm520_vm1, %v512_v9, %v513_v37  ;;  %v644_v9 = vpop.f32.mrf.mxu1 }
 0x122   : > { %v833_v7 = vadd.f32 %v809_v5, %v664_v6  ;;  %v666_v53 = vadd.f32 %v638_v19, %v525_v18  ;;  %v524_v6 = vsel %vm520_vm1, %v513_v37, %v514_v57  ;;  %v1692_v37 = vld [vmem:[#allocation4 + $0x260] sm:$0xff]  ;;  %v516_v18 = vrot.slane %v2982_v11, 7  ;;  %v1686_v11 = vld [vmem:[#allocation4 + $0x230] sm:$0xff] }
 0x124   : > { %v909_v24 = vadd.f32 %v3003_v30, %v833_v7  ;;  %v1699_v7 = vld [vmem:[#allocation4 + $0x298] sm:$0xff] }
 0x125   : > { %1150 = vmatmul.f32.gmra.mxu3 %v3104_v48  ;;  %1221 = vmatmul.f32.gmra.mxu0 %v3104_v48 }
 0x126   : > { %1469 = vmatmul.f32.gmra.mxu1 %v3104_v48  ;;  %1540 = vmatmul.f32.gmra.mxu2 %v3104_v48  ;;  %v770_v31 = vpop.f32.mrf.mxu2  ;;  %v927_v29 = vmax.f32 %v909_v24, 0.0 }
 0x127   : > { %v798_v10 = vrot.slane %v770_v31, 1  ;;  %1789 = vmatpush.msra.mxu0 %v1699_v7 }
 0x128   : > { %v3145_v43 = vmul.f32 %v992_v13, %v927_v29 }
 0x129   : > { %v808_v27 = vsel %vm803_vm2, %v797_v61, %v798_v10  ;;  %v1700_v61 = vld [vmem:[#allocation4 + $0x2a0] sm:$0xff]  ;;  %1790 = vmatpush.msra.mxu0 %v1697_v12 }
 0x12a   : > { %v834_v32 = vadd.f32 %v808_v27, %v665_v59  ;;  %1717 = vmatpush.msra.mxu3 %v1700_v61  ;;  %v1694_v59 = vld [vmem:[#allocation4 + $0x270] sm:$0xff]  ;;  %v1684_v61 = vld [vmem:[#allocation4 + $0x220] sm:$0xff] }
 0x12b   : > { %1791 = vmatpush.msra.mxu0 %v1695_v14  ;;  %v1680_v12 = vld [vmem:[#allocation4 + $0x200] sm:$0xff] }
 0x12c   : > { %v910_v44 = vadd.f32 %v3003_v30, %v834_v32  ;;  %1718 = vmatpush.msra.mxu3 %v1698_v60  ;;  %v523_v32 = vsel %vm520_vm1, %v514_v57, %v515_v25  ;;  %v1687_v57 = vld [vmem:[#allocation4 + $0x238] sm:$0xff] }
 0x12d   : > { %1153 = vmatmul.f32.gmra.mxu3 %v3116_v1  ;;  %1224 = vmatmul.f32.gmra.mxu0 %v3116_v1 }
 0x12e   : > { %1472 = vmatmul.f32.gmra.mxu1 %v3116_v1  ;;  %1543 = vmatmul.f32.gmra.mxu2 %v3116_v1  ;;  %v3127_v45 = vpop.f32.mrf.mxu2  ;;  %v928_v31 = vmax.f32 %v910_v44, 0.0 }
 0x12f   : > { %v799_v38 = vrot.slane %v3127_v45, 1  ;;  %v667_v45 = vadd.f32 %v641_v46, %v524_v6  ;;  %1792 = vmatpush.msra.mxu0 %v1693_v8  ;;  %v647_v46 = vpop.f32.mrf.mxu1  ;;  %v1683_v6 = vld [vmem:[#allocation4 + $0x218] sm:$0xff] }
 0x130   : > { %v3158_v2 = vmul.f32 %v997_v0, %v928_v31  ;;  %v522_v31 = vsel %vm520_vm1, %v515_v25, %v516_v18 }
 0x131   : > { %v807_v33 = vsel %vm803_vm2, %v798_v10, %v799_v38  ;;  %v1696_v10 = vld [vmem:[#allocation4 + $0x280] sm:$0xff] }
 0x132   : > { %v835_v56 = vadd.f32 %v807_v33, %v666_v53  ;;  %1719 = vmatpush.msra.mxu3 %v1696_v10  ;;  %v1007_v53 = vpop.permute.xlu2 %1006 }
 0x134   : > { %v911_v4 = vadd.f32 %v3003_v30, %v835_v56  ;;  %1720 = vmatpush.msra.mxu3 %v1694_v59 }
 0x135   : > { %1156 = vmatmul.f32.gmra.mxu3 %v3130_v20  ;;  %1227 = vmatmul.f32.gmra.mxu0 %v3130_v20 }
 0x136   : > { %1475 = vmatmul.f32.gmra.mxu1 %v3130_v20  ;;  %1546 = vmatmul.f32.gmra.mxu2 %v3130_v20  ;;  %v3143_v42 = vpop.f32.mrf.mxu2  ;;  %v929_v19 = vmax.f32 %v911_v4, 0.0 }
 0x137   : > { %v800_v58 = vrot.slane %v3143_v42, 1  ;;  %v1691_v42 = vld [vmem:[#allocation4 + $0x258] sm:$0xff]  ;;  %1721 = vmatpush.msra.mxu3 %v1692_v37  ;;  %v650_v60 = vpop.f32.mrf.mxu1 }
 0x138   : > { %v3170_v28 = vmul.f32 %v1002_v23, %v929_v19  ;;  %1793 = vmatpush.msra.mxu0 %v1691_v42  ;;  %v1681_v19 = vld [vmem:[#allocation4 + $0x208] sm:$0xff] }
 0x139   : > { %v806_v41 = vsel %vm803_vm2, %v799_v38, %v800_v58  ;;  %v668_v38 = vadd.f32 %v644_v9, %v523_v32  ;;  %1722 = vmatpush.msra.mxu3 %v1690_v40  ;;  %v521_v9 = vsel %vm520_vm1, %v516_v18, %v517_v26  ;;  %v1017_v26 = vpop.permute.xlu1 %1016 }
 0x13a   : > { %v836_v24 = vadd.f32 %v806_v41, %v667_v45  ;;  %1794 = vmatpush.msra.mxu0 %v1689_v50  ;;  %v1012_v41 = vpop.permute.xlu0 %1011 }
 0x13b   : > { %1723 = vmatpush.msra.mxu3 %v1688_v47 }
 0x13c   : > { %v912_v29 = vadd.f32 %v3003_v30, %v836_v24  ;;  %1795 = vmatpush.msra.mxu0 %v1687_v57  ;;  %v670_v24 = vadd.f32 %v650_v60, %v521_v9 }
 0x13d   : > { %1159 = vmatmul.f32.gmra.mxu3 %v3145_v43  ;;  %1230 = vmatmul.f32.gmra.mxu0 %v3145_v43 }
 0x13e   : > { %1478 = vmatmul.f32.gmra.mxu1 %v3145_v43  ;;  %1549 = vmatmul.f32.gmra.mxu2 %v3145_v43  ;;  %v779_v5 = vpop.f32.mrf.mxu2  ;;  %v930_v13 = vmax.f32 %v912_v29, 0.0  ;;  %v1022_v29 = vpop.permute.xlu2 %1021 }
 0x13f   : > { %v801_v27 = vrot.slane %v779_v5, 1  ;;  %1724 = vmatpush.msra.mxu3 %v1686_v11  ;;  %v1682_v5 = vld [vmem:[#allocation4 + $0x210] sm:$0xff]  ;;  %1796 = vmatpush.msra.mxu0 %v1685_v62 }
 0x140   : > { %v3182_v54 = vmul.f32 %v1007_v53, %v930_v13 }
 0x141   : > { %v805_v34 = vsel %vm803_vm2, %v800_v58, %v801_v27  ;;  %v669_v58 = vadd.f32 %v647_v46, %v522_v31  ;;  %1725 = vmatpush.msra.mxu3 %v1684_v61  ;;  %1797 = vmatpush.msra.mxu0 %v1683_v6 }
 0x142   : > { %v837_v44 = vadd.f32 %v805_v34, %v668_v38 }
 0x143   : > { %1726 = vmatpush.msra.mxu3 %v1682_v5  ;;  %1798 = vmatpush.msra.mxu0 %v1681_v19 }
 0x144   : > { %v913_v55 = vadd.f32 %v3003_v30, %v837_v44 }
 0x145   : > { %1162 = vmatmul.f32.gmra.mxu3 %v3158_v2  ;;  %1233 = vmatmul.f32.gmra.mxu0 %v3158_v2 }
 0x146   : > { %1481 = vmatmul.f32.gmra.mxu1 %v3158_v2  ;;  %1552 = vmatmul.f32.gmra.mxu2 %v3158_v2  ;;  %v782_v39 = vpop.f32.mrf.mxu2  ;;  %v931_v0 = vmax.f32 %v913_v55, 0.0 }
 0x147   : > { %v802_v33 = vrot.slane %v782_v39, 1  ;;  %1727 = vmatpush.msra.mxu3 %v1680_v12 }
 0x148   : > { %v3193_v7 = vmul.f32 %v1012_v41, %v931_v0 }
 0x149   : > { %v804_v56 = vsel %vm803_vm2, %v801_v27, %v802_v33  ;;  %v821_v10 = vsel %vm803_vm2, %v802_v33, %v785_v22 }
 0x14a   : > { %v838_v4 = vadd.f32 %v804_v56, %v669_v58  ;;  %v839_v21 = vadd.f32 %v821_v10, %v670_v24 }
 0x14c   : > { %v914_v45 = vadd.f32 %v3003_v30, %v838_v4  ;;  %v915_v22 = vadd.f32 %v3003_v30, %v839_v21 }
 0x14d   : > { %1165 = vmatmul.f32.gmra.mxu3 %v3170_v28  ;;  %1236 = vmatmul.f32.gmra.mxu0 %v3170_v28 }
 0x14e   : > { %1484 = vmatmul.f32.gmra.mxu1 %v3170_v28  ;;  %1555 = vmatmul.f32.gmra.mxu2 %v3170_v28  ;;  %v932_v25 = vmax.f32 %v914_v45, 0.0  ;;  %v933_v14 = vmax.f32 %v915_v22, 0.0 }
 0x150   : > { %v3211_v27 = vmul.f32 %v1017_v26, %v932_v25  ;;  %v3223_v34 = vmul.f32 %v1022_v29, %v933_v14 }
 0x155   : > { %1168 = vmatmul.f32.gmra.mxu3 %v3182_v54  ;;  %1239 = vmatmul.f32.gmra.mxu0 %v3182_v54 }
 0x156   : > { %1487 = vmatmul.f32.gmra.mxu1 %v3182_v54  ;;  %1558 = vmatmul.f32.gmra.mxu2 %v3182_v54 }
 0x15d   : > { %1171 = vmatmul.f32.gmra.mxu3 %v3193_v7  ;;  %1242 = vmatmul.f32.gmra.mxu0 %v3193_v7 }
 0x15e   : > { %1490 = vmatmul.f32.gmra.mxu1 %v3193_v7  ;;  %1561 = vmatmul.f32.gmra.mxu2 %v3193_v7 }
 0x162   : > { %v3208_v52 = vpop.f32.mrf.mxu0 }
 0x163   : > { %v3213_v59 = vpop.f32.mrf.mxu1 }
 0x165   : > { %1174 = vmatmul.f32.gmra.mxu3 %v3211_v27  ;;  %1245 = vmatmul.f32.gmra.mxu0 %v3211_v27 }
 0x166   : > { %1493 = vmatmul.f32.gmra.mxu1 %v3211_v27  ;;  %1564 = vmatmul.f32.gmra.mxu2 %v3211_v27 }
 0x168   : > { %v3219_v23 = vpop.f32.mrf.mxu3 }
 0x169   : > { %v1252_v8 = vrot.slane %v3219_v23, 7 }
 0x16a   : > { %v3221_v32 = vpop.f32.mrf.mxu0 }
 0x16b   : > { %v1449_v30 = vpop.f32.mrf.mxu1 }
 0x16d   : > { %1177 = vmatmul.f32.gmra.mxu3 %v3223_v34  ;;  %1248 = vmatmul.f32.gmra.mxu0 %v3223_v34 }
 0x16e   : > { %1496 = vmatmul.f32.gmra.mxu1 %v3223_v34  ;;  %1567 = vmatmul.f32.gmra.mxu2 %v3223_v34 }
 0x170   : > { %v1130_v37 = vpop.f32.mrf.mxu3 }
 0x171   : > { %v1254_v38 = vrot.slane %v1130_v37, 7 }
 0x172   : > { %v3230_v39 = vpop.f32.mrf.mxu0 }
 0x173   : > { %v1320_v40 = vsel %vm520_vm1, %v1252_v8, %v1254_v38  ;;  %v1452_v42 = vpop.f32.mrf.mxu1 }
 0x174   : > { %v3236_v13 = vadd.f32 %v1449_v30, %v1320_v40 }
 0x175   : > { %1728 = vmatmul.f32.vlgmr.msra.gmra.mxu3 %v3016_v49  ;;  %1799 = vmatmul.f32.vlgmr.msra.gmra.mxu0 %v3016_v49 }
 0x178   : > { %v1133_v44 = vpop.f32.mrf.mxu3 }
 0x179   : > { %v1256_v18 = vrot.slane %v1133_v44, 7 }
 0x17a   : > { %v3240_v46 = vpop.f32.mrf.mxu0 }
 0x17b   : > { %v1318_v33 = vsel %vm520_vm1, %v1254_v38, %v1256_v18  ;;  %v1455_v47 = vpop.f32.mrf.mxu1 }
 0x17c   : > { %v3244_v50 = vadd.f32 %v1452_v42, %v1318_v33 }
 0x17d   : > { %1731 = vmatmul.f32.gmra.mxu3 %v3026_v63  ;;  %1802 = vmatmul.f32.gmra.mxu0 %v3026_v63 }
 0x180   : > { %v1136_v53 = vpop.f32.mrf.mxu3 }
 0x181   : > { %v1258_v55 = vrot.slane %v1136_v53, 7 }
 0x182   : > { %v3248_v31 = vpop.f32.mrf.mxu0 }
 0x183   : > { %v1316_v49 = vsel %vm520_vm1, %v1256_v18, %v1258_v55  ;;  %v1458_v56 = vpop.f32.mrf.mxu1 }
 0x184   : > { %v3252_v11 = vadd.f32 %v1455_v47, %v1316_v49 }
 0x185   : > { %1734 = vmatmul.f32.gmra.mxu3 %v3037_v16  ;;  %1805 = vmatmul.f32.gmra.mxu0 %v3037_v16 }
 0x188   : > { %v1139_v57 = vpop.f32.mrf.mxu3 }
 0x189   : > { %v1260_v58 = vrot.slane %v1139_v57, 7 }
 0x18a   : > { %v3256_v61 = vpop.f32.mrf.mxu0 }
 0x18b   : > { %v1314_v63 = vsel %vm520_vm1, %v1258_v55, %v1260_v58  ;;  %v1461_v62 = vpop.f32.mrf.mxu1 }
 0x18c   : > { %v3260_v0 = vadd.f32 %v1458_v56, %v1314_v63 }
 0x18d   : > { %1737 = vmatmul.f32.gmra.mxu3 %v3048_v36  ;;  %1808 = vmatmul.f32.gmra.mxu0 %v3048_v36 }
 0x190   : > { %v1142_v4 = vpop.f32.mrf.mxu3 }
 0x191   : > { %v1262_v5 = vrot.slane %v1142_v4, 7 }
 0x192   : > { %v3264_v6 = vpop.f32.mrf.mxu0 }
 0x193   : > { %v1312_v16 = vsel %vm520_vm1, %v1260_v58, %v1262_v5  ;;  %v1464_v60 = vpop.f32.mrf.mxu1  ;;  %v1517_v58 = vpop.f32.mrf.mxu2 }
 0x194   : > { %v3268_v41 = vadd.f32 %v1461_v62, %v1312_v16 }
 0x195   : > { %1740 = vmatmul.f32.gmra.mxu3 %v3059_v51  ;;  %1811 = vmatmul.f32.gmra.mxu0 %v3059_v51 }
 0x198   : > { %v1145_v45 = vpop.f32.mrf.mxu3 }
 0x199   : > { %v1264_v9 = vrot.slane %v1145_v45, 7 }
 0x19a   : > { %v3272_v10 = vpop.f32.mrf.mxu0 }
 0x19b   : > { %v1310_v36 = vsel %vm520_vm1, %v1262_v5, %v1264_v9  ;;  %v1467_v19 = vpop.f32.mrf.mxu1 }
 0x19c   : > { %v3276_v12 = vadd.f32 %v1464_v60, %v1310_v36  ;;  %v1520_v60 = vpop.f32.mrf.mxu2 }
 0x19d   : > { %1743 = vmatmul.f32.gmra.mxu3 %v3070_v3  ;;  %1814 = vmatmul.f32.gmra.mxu0 %v3070_v3 }
 0x1a0   : > { %v1148_v24 = vpop.f32.mrf.mxu3 }
 0x1a1   : > { %v1266_v21 = vrot.slane %v1148_v24, 7 }
 0x1a2   : > { %v3280_v25 = vpop.f32.mrf.mxu0 }
 0x1a3   : > { %v1308_v51 = vsel %vm520_vm1, %v1264_v9, %v1266_v21  ;;  %v1470_v14 = vpop.f32.mrf.mxu1 }
 0x1a4   : > { %v3284_v26 = vadd.f32 %v1467_v19, %v1308_v51  ;;  %v1523_v51 = vpop.f32.mrf.mxu2 }
 0x1a5   : > { %1746 = vmatmul.f32.gmra.mxu3 %v3080_v17  ;;  %1817 = vmatmul.f32.gmra.mxu0 %v3080_v17 }
 0x1a8   : > { %v1151_v22 = vpop.f32.mrf.mxu3 }
 0x1a9   : > { %v1268_v29 = vrot.slane %v1151_v22, 7 }
 0x1aa   : > { %v3288_v30 = vpop.f32.mrf.mxu0 }
 0x1ab   : > { %v1306_v3 = vsel %vm520_vm1, %v1266_v21, %v1268_v29  ;;  %v1473_v44 = vpop.f32.mrf.mxu1 }
 0x1ac   : > { %v3292_v37 = vadd.f32 %v1470_v14, %v1306_v3 }
 0x1ad   : > { %1749 = vmatmul.f32.gmra.mxu3 %v3092_v35  ;;  %1820 = vmatmul.f32.gmra.mxu0 %v3092_v35 }
 0x1b0   : > { %v1154_v38 = vpop.f32.mrf.mxu3 }
 0x1b1   : > { %v1270_v40 = vrot.slane %v1154_v38, 7 }
 0x1b2   : > { %v3296_v42 = vpop.f32.mrf.mxu0 }
 0x1b3   : > { %v1304_v17 = vsel %vm520_vm1, %v1268_v29, %v1270_v40 }
 0x1b4   : > { %v3300_v18 = vadd.f32 %v1473_v44, %v1304_v17 }
 0x1b5   : > { %1752 = vmatmul.f32.gmra.mxu3 %v3104_v48  ;;  %1823 = vmatmul.f32.gmra.mxu0 %v3104_v48 }
 0x1b8   : > { %v1157_v33 = vpop.f32.mrf.mxu3 }
 0x1b9   : > { %v1272_v47 = vrot.slane %v1157_v33, 7 }
 0x1ba   : > { %v3304_v53 = vpop.f32.mrf.mxu0 }
 0x1bb   : > { %v3308_v35 = vsel %vm520_vm1, %v1270_v40, %v1272_v47  ;;  %v1526_v40 = vpop.f32.mrf.mxu2 }
 0x1bd   : > { %1755 = vmatmul.f32.gmra.mxu3 %v3116_v1  ;;  %1826 = vmatmul.f32.gmra.mxu0 %v3116_v1 }
 0x1c0   : > { %v3312_v55 = vpop.f32.mrf.mxu3 }
 0x1c1   : > { %v3870_v49 = vrot.slane %v3312_v55, 7 }
 0x1c2   : > { %v3315_v56 = vpop.f32.mrf.mxu0 }
 0x1c3   : > { %v3321_v48 = vsel %vm520_vm1, %v1272_v47, %v3870_v49  ;;  %v3869_v63 = vrot.slane %v3315_v56, 7 }
 0x1c5   : > { %1758 = vmatmul.f32.gmra.mxu3 %v3130_v20  ;;  %1829 = vmatmul.f32.gmra.mxu0 %v3130_v20 }
 0x1c8   : > { %v3325_v57 = vpop.f32.mrf.mxu3 }
 0x1ca   : > { %v1237_v1 = vpop.f32.mrf.mxu0 }
 0x1cb   : > { %v1279_v62 = vrot.slane %v1237_v1, 7 }
 0x1cd   : > { %1761 = vmatmul.f32.gmra.mxu3 %v3145_v43  ;;  %1832 = vmatmul.f32.gmra.mxu0 %v3145_v43  ;;  %v3334_v4 = vsel %vm520_vm1, %v3869_v63, %v1279_v62 }
 0x1d0   : > { %v3336_v5 = vpop.f32.mrf.mxu3 }
 0x1d1   : > { %v3866_v9 = vrot.slane %v3336_v5, 7 }
 0x1d2   : > { %v1240_v20 = vpop.f32.mrf.mxu0 }
 0x1d3   : > { %v1281_v16 = vrot.slane %v1240_v20, 7 }
 0x1d5   : > { %1764 = vmatmul.f32.gmra.mxu3 %v3158_v2  ;;  %1835 = vmatmul.f32.gmra.mxu0 %v3158_v2  ;;  %v3342_v45 = vsel %vm520_vm1, %v1279_v62, %v1281_v16 }
 0x1d8   : > { %v1169_v43 = vpop.f32.mrf.mxu3 }
 0x1d9   : > { %v1280_v36 = vrot.slane %v1169_v43, 7 }
 0x1da   : > { %v1243_v19 = vpop.f32.mrf.mxu0 }
 0x1db   : > { %v3349_v24 = vsel %vm520_vm1, %v3866_v9, %v1280_v36  ;;  %v1283_v21 = vrot.slane %v1243_v19, 7 }
 0x1dd   : > { %1767 = vmatmul.f32.gmra.mxu3 %v3170_v28  ;;  %1838 = vmatmul.f32.gmra.mxu0 %v3170_v28  ;;  %v3355_v2 = vsel %vm520_vm1, %v1281_v16, %v1283_v21  ;;  %v3377_v16 = vpop.f32.mrf.mxu2 }
 0x1e0   : > { %v1172_v22 = vpop.f32.mrf.mxu3 }
 0x1e1   : > { %v1282_v14 = vrot.slane %v1172_v22, 7 }
 0x1e2   : > { %v1246_v29 = vpop.f32.mrf.mxu0 }
 0x1e3   : > { %v3359_v3 = vsel %vm520_vm1, %v1280_v36, %v1282_v14  ;;  %v1285_v38 = vrot.slane %v1246_v29, 7 }
 0x1e5   : > { %1770 = vmatmul.f32.gmra.mxu3 %v3182_v54  ;;  %1841 = vmatmul.f32.gmra.mxu0 %v3182_v54  ;;  %v3365_v28 = vsel %vm520_vm1, %v1283_v21, %v1285_v38 }
 0x1e6   : > { %3874 = vst [vmem:[#allocation10_spill] sm:$0xff] %v3365_v28 }
 0x1e8   : > { %v1175_v44 = vpop.f32.mrf.mxu3 }
 0x1e9   : > { %v1284_v17 = vrot.slane %v1175_v44, 7  ;;  %v1532_v44 = vpop.f32.mrf.mxu2 }
 0x1ea   : > { %v1249_v33 = vpop.f32.mrf.mxu0 }
 0x1eb   : > { %v3369_v47 = vsel %vm520_vm1, %v1282_v14, %v1284_v17  ;;  %v1287_v1 = vrot.slane %v1249_v33, 7 }
 0x1ed   : > { %1773 = vmatmul.f32.gmra.mxu3 %v3193_v7  ;;  %1844 = vmatmul.f32.gmra.mxu0 %v3193_v7  ;;  %v3375_v54 = vsel %vm520_vm1, %v1285_v38, %v1287_v1  ;;  %v1253_v7 = vrot.slane %v3208_v52, 7 }
 0x1ef   : > { %v1323_v22 = vsel %vm520_vm1, %v1287_v1, %v1253_v7 }
 0x1f0   : > { %v1178_v62 = vpop.f32.mrf.mxu3  ;;  %v1572_v23 = vadd.f32 %v1517_v58, %v1323_v22 }
 0x1f1   : > { %v1286_v20 = vrot.slane %v1178_v62, 7 }
 0x1f2   : > { %v3379_v43 = vpop.f32.mrf.mxu0 }
 0x1f3   : > { %v3383_v36 = vsel %vm520_vm1, %v1284_v17, %v1286_v20  ;;  %v1322_v19 = vsel %vm520_vm1, %v1286_v20, %v1252_v8  ;;  %v3865_v29 = vrot.slane %v3379_v43, 1 }
 0x1f4   : > { %v1571_v62 = vadd.f32 %v3213_v59, %v1322_v19  ;;  %v1257_v59 = vrot.slane %v3230_v39, 7  ;;  %v1259_v39 = vrot.slane %v3240_v46, 7  ;;  %v1261_v46 = vrot.slane %v3248_v31, 7 }
 0x1f5   : > { %1776 = vmatmul.f32.gmra.mxu3 %v3211_v27  ;;  %1847 = vmatmul.f32.gmra.mxu0 %v3211_v27  ;;  %v1255_v27 = vrot.slane %v3221_v32, 7 }
 0x1f7   : > { %v1321_v20 = vsel %vm520_vm1, %v1253_v7, %v1255_v27  ;;  %v1319_v9 = vsel %vm520_vm1, %v1255_v27, %v1257_v59  ;;  %v1317_v27 = vsel %vm520_vm1, %v1257_v59, %v1259_v39  ;;  %v1315_v59 = vsel %vm520_vm1, %v1259_v39, %v1261_v46 }
 0x1f8   : > { %v3392_v21 = vpop.f32.mrf.mxu3 }
 0x1f9   : > { %v3867_v33 = vrot.slane %v3392_v21, 1 }
 0x1fa   : > { %v1803_v14 = vpop.f32.mrf.mxu0 }
 0x1fb   : > { %v1857_v38 = vrot.slane %v1803_v14, 1  ;;  %v1574_v14 = vadd.f32 %v1520_v60, %v1321_v20 }
 0x1fd   : > { %v1923_v8 = vsel %vm803_vm2, %v3865_v29, %v1857_v38  ;;  %1779 = vmatmul.f32.gmra.mxu3 %v3223_v34  ;;  %1850 = vmatmul.f32.gmra.mxu0 %v3223_v34 }
 0x1fe   : > { %v3403_v52 = vadd.f32 %v1923_v8, %v1572_v23  ;;  %v1535_v8 = vpop.f32.mrf.mxu2 }
 0x200   : > { %3875 = vst [vmem:[#allocation11_spill] sm:$0xff] %v3403_v52  ;;  %v1732_v17 = vpop.f32.mrf.mxu3 }
 0x201   : > { %v1856_v1 = vrot.slane %v1732_v17, 1 }
 0x202   : > { %v1806_v58 = vpop.f32.mrf.mxu0 }
 0x203   : > { %v1922_v22 = vsel %vm803_vm2, %v3867_v33, %v1856_v1  ;;  %v1859_v34 = vrot.slane %v1806_v58, 1 }
 0x204   : > { %v3414_v23 = vadd.f32 %v1922_v22, %v1571_v62  ;;  %v1576_v62 = vadd.f32 %v1523_v51, %v1319_v9 }
 0x205   : > { %v1921_v32 = vsel %vm803_vm2, %v1857_v38, %v1859_v34 }
 0x206   : > { %3876 = vst [vmem:[#allocation12_spill] sm:$0xff] %v3414_v23  ;;  %v3418_v17 = vadd.f32 %v1921_v32, %v1574_v14  ;;  %v1538_v14 = vpop.f32.mrf.mxu2 }
 0x208   : > { %3877 = vst [vmem:[#allocation13_spill] sm:$0xff] %v3418_v17  ;;  %v1735_v19 = vpop.f32.mrf.mxu3 }
 0x209   : > { %v1858_v29 = vrot.slane %v1735_v19, 1 }
 0x20a   : > { %v1809_v7 = vpop.f32.mrf.mxu0 }
 0x20b   : > { %v1920_v58 = vsel %vm803_vm2, %v1856_v1, %v1858_v29  ;;  %v1861_v60 = vrot.slane %v1809_v7, 1 }
 0x20c   : > { %v3426_v20 = vadd.f32 %v1920_v58, %v3236_v13  ;;  %v1578_v13 = vadd.f32 %v1526_v40, %v1317_v27  ;;  %v1263_v27 = vrot.slane %v3256_v61, 7 }
 0x20d   : > { %v1919_v38 = vsel %vm803_vm2, %v1859_v34, %v1861_v60 }
 0x20e   : > { %3878 = vst [vmem:[#allocation14_spill] sm:$0xff] %v3426_v20  ;;  %v3430_v22 = vadd.f32 %v1919_v38, %v1576_v62  ;;  %v1541_v38 = vpop.f32.mrf.mxu2  ;;  %v1313_v39 = vsel %vm520_vm1, %v1261_v46, %v1263_v27 }
 0x210   : > { %3879 = vst [vmem:[#allocation15_spill] sm:$0xff] %v3430_v22  ;;  %v1738_v32 = vpop.f32.mrf.mxu3 }
 0x211   : > { %v1860_v19 = vrot.slane %v1738_v32, 1 }
 0x212   : > { %v1812_v33 = vpop.f32.mrf.mxu0 }
 0x213   : > { %v1918_v9 = vsel %vm803_vm2, %v1858_v29, %v1860_v19  ;;  %v1863_v51 = vrot.slane %v1812_v33, 1 }
 0x214   : > { %v3438_v1 = vadd.f32 %v1918_v9, %v3244_v50  ;;  %v1580_v50 = vadd.f32 %v3377_v16, %v1315_v59  ;;  %v1265_v59 = vrot.slane %v3264_v6, 7 }
 0x215   : > { %v1917_v34 = vsel %vm803_vm2, %v1861_v60, %v1863_v51 }
 0x216   : > { %3880 = vst [vmem:[#allocation16_spill] sm:$0xff] %v3438_v1  ;;  %v3442_v7 = vadd.f32 %v1917_v34, %v1578_v13 }
 0x218   : > { %3881 = vst [vmem:[#allocation17_spill] sm:$0xff] %v3442_v7  ;;  %v1741_v58 = vpop.f32.mrf.mxu3  ;;  %v3888_v7 = vrot.slane %v3315_v56, 7 }
 0x219   : > { %v1862_v62 = vrot.slane %v1741_v58, 1  ;;  %v1582_v58 = vadd.f32 %v1532_v44, %v1313_v39  ;;  %v1267_v39 = vrot.slane %v3272_v10, 7  ;;  %v1269_v10 = vrot.slane %v3280_v25, 7 }
 0x21a   : > { %v1815_v32 = vpop.f32.mrf.mxu0 }
 0x21b   : > { %v1916_v40 = vsel %vm803_vm2, %v1860_v19, %v1862_v62  ;;  %v1865_v29 = vrot.slane %v1815_v32, 1 }
 0x21c   : > { %v3451_v33 = vadd.f32 %v1916_v40, %v3252_v11  ;;  %v3462_v11 = vpop.f32.mrf.mxu2 }
 0x21d   : > { %v1915_v60 = vsel %vm803_vm2, %v1863_v51, %v1865_v29 }
 0x21e   : > { %3882 = vst [vmem:[#allocation18_spill] sm:$0xff] %v3451_v33  ;;  %v3455_v31 = vadd.f32 %v1915_v60, %v1580_v50  ;;  %v1275_v33 = vrot.slane %v3304_v53, 7 }
 0x220   : > { %v1744_v9 = vpop.f32.mrf.mxu3 }
 0x221   : > { %v1864_v13 = vrot.slane %v1744_v9, 1 }
 0x222   : > { %v1818_v34 = vpop.f32.mrf.mxu0 }
 0x223   : > { %v1914_v19 = vsel %vm803_vm2, %v1862_v62, %v1864_v13  ;;  %v1867_v16 = vrot.slane %v1818_v34, 1  ;;  %v1311_v62 = vsel %vm520_vm1, %v1263_v27, %v1265_v59 }
 0x224   : > { %v3465_v32 = vadd.f32 %v1914_v19, %v3260_v0  ;;  %v1584_v9 = vadd.f32 %v1535_v8, %v1311_v62  ;;  %v3481_v34 = vpop.f32.mrf.mxu2 }
 0x225   : > { %v1913_v51 = vsel %vm803_vm2, %v1865_v29, %v1867_v16 }
 0x226   : > { %3883 = vst [vmem:[#allocation19_spill] sm:$0xff] %v3465_v32  ;;  %v3469_v61 = vadd.f32 %v1913_v51, %v1582_v58 }
 0x228   : > { %v1747_v40 = vpop.f32.mrf.mxu3 }
 0x229   : > { %v1866_v50 = vrot.slane %v1747_v40, 1 }
 0x22a   : > { %v1821_v46 = vpop.f32.mrf.mxu0 }
 0x22b   : > { %v1912_v44 = vsel %vm803_vm2, %v1864_v13, %v1866_v50  ;;  %v1869_v60 = vrot.slane %v1821_v46, 1  ;;  %v1309_v13 = vsel %vm520_vm1, %v1265_v59, %v1267_v39 }
 0x22c   : > { %v3477_v0 = vadd.f32 %v1912_v44, %v3268_v41  ;;  %v1586_v51 = vadd.f32 %v1538_v14, %v1309_v13  ;;  %v1550_v62 = vpop.f32.mrf.mxu2  ;;  %v1307_v14 = vsel %vm520_vm1, %v1267_v39, %v1269_v10 }
 0x22d   : > { %v1911_v29 = vsel %vm803_vm2, %v1867_v16, %v1869_v60 }
 0x22e   : > { %3884 = vst [vmem:[#allocation20_spill] sm:$0xff] %v3477_v0  ;;  %v3483_v6 = vadd.f32 %v1911_v29, %v1584_v9  ;;  %v3498_v29 = vpop.f32.mrf.mxu1  ;;  %v3887_v0 = vrot.slane %v3312_v55, 7 }
 0x230   : > { %v1750_v19 = vpop.f32.mrf.mxu3 }
 0x231   : > { %v1868_v58 = vrot.slane %v1750_v19, 1 }
 0x232   : > { %v1824_v27 = vpop.f32.mrf.mxu0 }
 0x233   : > { %v1910_v8 = vsel %vm803_vm2, %v1866_v50, %v1868_v58  ;;  %v1871_v41 = vrot.slane %v1824_v27, 1 }
 0x234   : > { %v3491_v40 = vadd.f32 %v1910_v8, %v3276_v12 }
 0x235   : > { %v1909_v16 = vsel %vm803_vm2, %v1869_v60, %v1871_v41  ;;  %v1588_v60 = vadd.f32 %v1541_v38, %v1307_v14 }
 0x236   : > { %3885 = vst [vmem:[#allocation21_spill] sm:$0xff] %v3491_v40  ;;  %v3495_v46 = vadd.f32 %v1909_v16, %v1586_v51  ;;  %v1553_v51 = vpop.f32.mrf.mxu2  ;;  %v1479_v16 = vpop.f32.mrf.mxu1 }
 0x238   : > { %v1753_v44 = vpop.f32.mrf.mxu3 }
 0x239   : > { %v1870_v9 = vrot.slane %v1753_v44, 1 }
 0x23a   : > { %v3500_v59 = vpop.f32.mrf.mxu0 }
 0x23b   : > { %v1908_v12 = vsel %vm803_vm2, %v1868_v58, %v1870_v9  ;;  %v3868_v50 = vrot.slane %v3500_v59, 1 }
 0x23c   : > { %v3508_v19 = vadd.f32 %v1908_v12, %v3284_v26 }
 0x23d   : > { %v1907_v25 = vsel %vm803_vm2, %v1871_v41, %v3868_v50 }
 0x23e   : > { %v3514_v27 = vadd.f32 %v1907_v25, %v1588_v60  ;;  %v1556_v12 = vpop.f32.mrf.mxu2 }
 0x240   : > { %v1756_v13 = vpop.f32.mrf.mxu3 }
 0x241   : > { %v1872_v8 = vrot.slane %v1756_v13, 1 }
 0x242   : > { %v3516_v39 = vpop.f32.mrf.mxu0 }
 0x243   : > { %v1906_v58 = vsel %vm803_vm2, %v1870_v9, %v1872_v8  ;;  %v1482_v9 = vpop.f32.mrf.mxu1  ;;  %v1875_v56 = vrot.slane %v3516_v39, 1 }
 0x244   : > { %v3521_v38 = vadd.f32 %v1906_v58, %v3292_v37 }
 0x246   : > { %v1559_v13 = vpop.f32.mrf.mxu2 }
 0x248   : > { %v3523_v26 = vpop.f32.mrf.mxu3 }
 0x249   : > { %v3871_v44 = vrot.slane %v3523_v26, 1 }
 0x24a   : > { %v3526_v14 = vpop.f32.mrf.mxu0 }
 0x24b   : > { %v1904_v41 = vsel %vm803_vm2, %v1872_v8, %v3871_v44  ;;  %v1485_v58 = vpop.f32.mrf.mxu1  ;;  %v1271_v8 = vrot.slane %v3288_v30, 7 }
 0x24c   : > { %v3533_v60 = vadd.f32 %v1904_v41, %v3300_v18  ;;  %v1273_v18 = vrot.slane %v3296_v42, 7  ;;  %v1276_v41 = vrot.slane %v3325_v57, 7 }
 0x24d   : > { %v1305_v32 = vsel %vm520_vm1, %v1269_v10, %v1271_v8  ;;  %v1299_v10 = vsel %vm520_vm1, %v1275_v33, %v3888_v7 }
 0x24e   : > { %v1562_v49 = vpop.f32.mrf.mxu2  ;;  %v1303_v22 = vsel %vm520_vm1, %v1271_v8, %v1273_v18  ;;  %v1298_v30 = vsel %vm520_vm1, %v3887_v0, %v1276_v41  ;;  %v1590_v57 = vadd.f32 %v3462_v11, %v1305_v32  ;;  %v1301_v53 = vsel %vm520_vm1, %v1273_v18, %v1275_v33 }
 0x24f   : > { %v3889_v8 = vrot.slane %v3336_v5, 7  ;;  %v1594_v11 = vadd.f32 %v1550_v62, %v1301_v53  ;;  %v1595_v32 = vadd.f32 %v1482_v9, %v1298_v30  ;;  %v2034_v5 = vld [vmem:[%s3859_s4] sm:$0x3]  ;;  %v1600_v33 = vadd.f32 %v1559_v13, %v3342_v45 }
 0x250   : > { %v3535_v25 = vpop.f32.mrf.mxu3  ;;  %v1602_v9 = vadd.f32 %v1562_v49, %v3355_v2  ;;  %v3890_v45 = vrot.slane %v3500_v59, 1  ;;  %v3610_v53 = vperm.slane %v2034_v5, 0 }
 0x251   : > { %v1296_v55 = vsel %vm520_vm1, %v1276_v41, %v3889_v8 }
 0x252   : > { %v1836_v37 = vpop.f32.mrf.mxu0 }
 0x253   : > { %v1488_v20 = vpop.f32.mrf.mxu1  ;;  %v1879_v62 = vrot.slane %v1836_v37, 1 }
 0x256   : > { %v3546_v44 = vpop.f32.mrf.mxu2 }
 0x257   : > { %3886 = vst [vmem:[#allocation22_spill] sm:$0xff] %v3546_v44  ;;  %v1592_v44 = vadd.f32 %v3481_v34, %v1303_v22  ;;  %v1596_v22 = vadd.f32 %v1553_v51, %v1299_v10  ;;  %v1598_v34 = vadd.f32 %v1556_v12, %v3334_v4  ;;  %v1877_v4 = vrot.slane %v3526_v14, 1 }
 0x258   : > { %v3537_v50 = vpop.f32.mrf.mxu3 }
 0x259   : > { %v1901_v2 = vsel %vm803_vm2, %v1877_v4, %v1879_v62  ;;  %v1903_v30 = vsel %vm803_vm2, %v1875_v56, %v1877_v4 }
 0x25a   : > { %v1839_v63 = vpop.f32.mrf.mxu0 }
 0x25b   : > { %v1491_v17 = vpop.f32.mrf.mxu1  ;;  %v1881_v18 = vrot.slane %v1839_v63, 1 }
 0x25c   : > { %v1601_v12 = vadd.f32 %v1491_v17, %v3359_v3 }
 0x25d   : > { %v1899_v14 = vsel %vm803_vm2, %v1879_v62, %v1881_v18  ;;  %v1876_v62 = vrot.slane %v3535_v25, 1 }
 0x25e   : > { %v1951_v10 = vadd.f32 %v1899_v14, %v1596_v22  ;;  %v1947_v22 = vadd.f32 %v1903_v30, %v1592_v44 }
 0x260   : > { %v3539_v23 = vpop.f32.mrf.mxu3 }
 0x261   : > { %v1880_v17 = vrot.slane %v3539_v23, 1 }
 0x262   : > { %v1842_v28 = vpop.f32.mrf.mxu0 }
 0x263   : > { %v1883_v40 = vrot.slane %v1842_v28, 1  ;;  %v1597_v28 = vadd.f32 %v1485_v58, %v1296_v55  ;;  %v1568_v58 = vpop.f32.mrf.mxu2  ;;  %v1494_v49 = vpop.f32.mrf.mxu1 }
 0x264   : > { %v1606_v13 = vadd.f32 %v1568_v58, %v3375_v54  ;;  %v1603_v30 = vadd.f32 %v1494_v49, %v3369_v47 }
 0x265   : > { %v1897_v63 = vsel %vm803_vm2, %v1881_v18, %v1883_v40 }
 0x266   : > { %v1953_v59 = vadd.f32 %v1897_v63, %v1598_v34  ;;  %v1949_v34 = vadd.f32 %v1901_v2, %v1594_v11 }
 0x268   : > { %v3541_v1 = vpop.f32.mrf.mxu3 }
 0x26a   : > { %v1845_v52 = vpop.f32.mrf.mxu0 }
 0x26b   : > { %v1885_v42 = vrot.slane %v1845_v52, 1  ;;  %v3570_v52 = vadd.f32 %v1479_v16, %v3321_v48  ;;  %v1599_v48 = vadd.f32 %v1488_v20, %v3349_v24  ;;  %v3589_v24 = vperm.slane %v2034_v5, 1 }
 0x26c   : > { %v1905_v20 = vsel %vm803_vm2, %v3890_v45, %v1875_v56  ;;  %v3891_v45 = vrot.slane %v3379_v43, 1  ;;  %v3892_v43 = vrot.slane %v3523_v26, 1 }
 0x26d   : > { %v1895_v7 = vsel %vm803_vm2, %v1883_v40, %v1885_v42  ;;  %v1882_v40 = vrot.slane %v3541_v1, 1  ;;  %v2065_v58 = vadd.f32 %v3589_v24, %v1951_v10  ;;  %v2063_v25 = vadd.f32 %v3589_v24, %v1949_v34 }
 0x26e   : > { %v1955_v41 = vadd.f32 %v1895_v7, %v1600_v33  ;;  %v1902_v14 = vsel %vm803_vm2, %v3892_v43, %v1876_v62 }
 0x26f   : > { %v1896_v54 = vsel %vm803_vm2, %v1880_v17, %v1882_v40  ;;  %v2099_v10 = vmax.f32 %v2063_v25, 0.0 }
 0x270   : > { %v1774_v0 = vpop.f32.mrf.mxu3  ;;  %v2069_v23 = vadd.f32 %v3589_v24, %v1955_v41  ;;  %v1952_v4 = vadd.f32 %v1896_v54, %v1597_v28 }
 0x271   : > { %v1884_v39 = vrot.slane %v1774_v0, 1  ;;  %v1945_v0 = vadd.f32 %v1905_v20, %v1590_v57 }
 0x272   : > { %v3581_v51 = vpop.f32.mrf.mxu0 }
 0x273   : > { %v1887_v16 = vrot.slane %v3581_v51, 1  ;;  %v1894_v1 = vsel %vm803_vm2, %v1882_v40, %v1884_v39  ;;  %v2061_v40 = vadd.f32 %v3589_v24, %v1947_v22  ;;  %v2059_v26 = vadd.f32 %v3589_v24, %v1945_v0 }
 0x274   : > { %v1954_v7 = vadd.f32 %v1894_v1, %v1599_v48 }
 0x275   : > { %v1893_v3 = vsel %vm803_vm2, %v1885_v42, %v1887_v16  ;;  %v1878_v42 = vrot.slane %v3537_v50, 1  ;;  %v2067_v50 = vadd.f32 %v3589_v24, %v1953_v59  ;;  %v2097_v49 = vmax.f32 %v2061_v40, 0.0 }
 0x276   : > { %v1957_v37 = vadd.f32 %v1893_v3, %v1602_v9  ;;  %v2105_v9 = vmax.f32 %v2069_v23, 0.0  ;;  %v2068_v20 = vadd.f32 %v3610_v53, %v1954_v7  ;;  %v1497_v3 = vpop.f32.mrf.mxu1  ;;  %v2095_v54 = vmax.f32 %v2059_v26, 0.0 }
 0x277   : > { %v1898_v56 = vsel %vm803_vm2, %v1878_v42, %v1880_v17  ;;  %v1900_v48 = vsel %vm803_vm2, %v1876_v62, %v1878_v42  ;;  %v2103_v28 = vmax.f32 %v2067_v50, 0.0  ;;  %v2055_v50 = vadd.f32 %v3589_v24, %v3495_v46  ;;  %v3676_v46 = vld [vmem:[%s3861_s6 + $0x8] sm:$0xff] }
 0x278   : > { %v1777_v8 = vpop.f32.mrf.mxu3  ;;  %v2071_v55 = vadd.f32 %v3589_v24, %v1957_v37  ;;  %v1950_v41 = vadd.f32 %v1898_v56, %v1595_v32  ;;  %v1591_v32 = vadd.f32 %v3498_v29, %v3308_v35  ;;  %v1948_v2 = vadd.f32 %v1900_v48, %v3570_v52 }
 0x279   : > { %v1886_v18 = vrot.slane %v1777_v8, 1  ;;  %v2101_v37 = vmax.f32 %v2065_v58, 0.0  ;;  %v1605_v35 = vadd.f32 %v1497_v3, %v3383_v36  ;;  %v2104_v42 = vmax.f32 %v2068_v20, 0.0  ;;  %v3895_v20 = vld [vmem:[#allocation17_spill] sm:$0xff] }
 0x27a   : > { %v3619_v5 = vpop.f32.mrf.mxu0  ;;  %v2107_v33 = vmax.f32 %v2071_v55, 0.0  ;;  %v1946_v1 = vadd.f32 %v1902_v14, %v1591_v32  ;;  %v2064_v52 = vadd.f32 %v3610_v53, %v1950_v41  ;;  %v3893_v55 = vrot.slane %v3392_v21, 1  ;;  %v3896_v14 = vld [vmem:[#allocation20_spill] sm:$0xff] }
 0x27b   : > { %v1892_v57 = vsel %vm803_vm2, %v1884_v39, %v1886_v18  ;;  %v1889_v11 = vrot.slane %v3619_v5, 1  ;;  %v2062_v34 = vadd.f32 %v3610_v53, %v1948_v2  ;;  %v2057_v56 = vadd.f32 %v3589_v24, %v3514_v27  ;;  %v3897_v2 = vld [vmem:[#allocation15_spill] sm:$0xff]  ;;  %v2207_v5 = vld [vmem:[%s3862_s7 + $0x48] sm:$0xff] }
 0x27c   : > { %v1956_v63 = vadd.f32 %v1892_v57, %v1601_v12  ;;  %2158 = vmatpush.msrb.mxu3 %v2107_v33  ;;  %v2060_v7 = vadd.f32 %v3610_v53, %v1946_v1  ;;  %v2058_v57 = vadd.f32 %v3610_v53, %v3533_v60  ;;  %v2056_v58 = vadd.f32 %v3610_v53, %v3521_v38  ;;  %v2209_v1 = vld [vmem:[%s3862_s7 + $0x58] sm:$0xff] }
 0x27d   : > { %v1925_v44 = vsel %vm803_vm2, %v1889_v11, %v3891_v45  ;;  %v2098_v22 = vmax.f32 %v2062_v34, 0.0  ;;  %v2093_v27 = vmax.f32 %v2057_v56, 0.0  ;;  %v2091_v48 = vmax.f32 %v2055_v50, 0.0  ;;  %v3904_v56 = vld [vmem:[#allocation22_spill] sm:$0xff]  ;;  %v3906_v50 = vld [vmem:[#allocation12_spill] sm:$0xff] }
 0x27e   : > { %v3636_v39 = vadd.f32 %v1925_v44, %v1606_v13  ;;  %2159 = vmatpush.msrb.mxu3 %v2105_v9  ;;  %v2070_v12 = vadd.f32 %v3610_v53, %v1956_v63  ;;  %v2066_v13 = vadd.f32 %v3610_v53, %v1952_v4  ;;  %v2053_v4 = vadd.f32 %v3589_v24, %v3483_v6  ;;  %v2213_v6 = vld [vmem:[%s3862_s7 + $0x78] sm:$0xff] }
 0x27f   : > { %v2096_v63 = vmax.f32 %v2060_v7, 0.0  ;;  %v2051_v60 = vadd.f32 %v3589_v24, %v3469_v61  ;;  %v2094_v41 = vmax.f32 %v2058_v57, 0.0  ;;  %v2054_v38 = vadd.f32 %v3610_v53, %v3508_v19  ;;  %v2212_v61 = vld [vmem:[%s3862_s7 + $0x70] sm:$0xff] }
 0x280   : > { %v1780_v17 = vpop.f32.mrf.mxu3  ;;  %2160 = vmatpush.msrb.mxu3 %v2103_v28  ;;  %v2106_v59 = vmax.f32 %v2070_v12, 0.0  ;;  %v2102_v0 = vmax.f32 %v2066_v13, 0.0  ;;  %v2089_v45 = vmax.f32 %v2053_v4, 0.0  ;;  %v2049_v44 = vadd.f32 %v3589_v24, %v3455_v31  ;;  %v3894_v28 = vld [vmem:[#allocation21_spill] sm:$0xff]  ;;  %v3898_v13 = vld [vmem:[#allocation19_spill] sm:$0xff]  ;;  %v3905_v7 = vld [vmem:[#allocation14_spill] sm:$0xff] }
 0x281   : > { %v1888_v29 = vrot.slane %v1780_v17, 1  ;;  %v2092_v25 = vmax.f32 %v2056_v58, 0.0  ;;  %v2052_v12 = vadd.f32 %v3610_v53, %v3894_v28  ;;  %v2087_v19 = vmax.f32 %v2051_v60, 0.0  ;;  %v2211_v31 = vld [vmem:[%s3862_s7 + $0x68] sm:$0xff]  ;;  %v2224_v28 = vld [vmem:[%s3862_s7 + $0xd0] sm:$0xff] }
 0x282   : > { %2118 = vmatpush.msra.mxu1 %v2106_v59  ;;  %2161 = vmatpush.msrb.mxu3 %v2101_v37  ;;  %v2047_v32 = vadd.f32 %v3589_v24, %v3895_v20  ;;  %v2090_v43 = vmax.f32 %v2054_v38, 0.0  ;;  %v2050_v40 = vadd.f32 %v3610_v53, %v3896_v14  ;;  %v2085_v3 = vmax.f32 %v2049_v44, 0.0  ;;  %v2210_v59 = vld [vmem:[%s3862_s7 + $0x60] sm:$0xff]  ;;  %v2201_v38 = vld [vmem:[%s3862_s7 + $0x18] sm:$0xff]  ;;  %v2200_v44 = vld [vmem:[%s3862_s7 + $0x10] sm:$0xff] }
 0x283   : > { %v1890_v8 = vsel %vm803_vm2, %v1886_v18, %v1888_v29  ;;  %v1924_v47 = vsel %vm803_vm2, %v1888_v29, %v3893_v55  ;;  %v2100_v18 = vmax.f32 %v2064_v52, 0.0  ;;  %v2045_v17 = vadd.f32 %v3589_v24, %v3897_v2  ;;  %v3899_v29 = vld [vmem:[#allocation13_spill] sm:$0xff]  ;;  %v3901_v55 = vld [vmem:[#allocation11_spill] sm:$0xff]  ;;  %v2220_v20 = vld [vmem:[%s3862_s7 + $0xb0] sm:$0xff] }
 0x284   : > { %v1958_v36 = vadd.f32 %v1890_v8, %v1603_v30  ;;  %v1960_v23 = vadd.f32 %v1924_v47, %v1605_v35  ;;  %2119 = vmatpush.msra.mxu1 %v2104_v42  ;;  %2162 = vmatpush.msrb.mxu3 %v2099_v10  ;;  %v2088_v37 = vmax.f32 %v2052_v12, 0.0  ;;  %v2048_v30 = vadd.f32 %v3610_v53, %v3898_v13  ;;  %v3900_v10 = vld [vmem:[#allocation18_spill] sm:$0xff]  ;;  %v2223_v12 = vld [vmem:[%s3862_s7 + $0xc8] sm:$0xff]  ;;  %v2218_v14 = vld [vmem:[%s3862_s7 + $0xa0] sm:$0xff] }
 0x285   : > { %v2083_v35 = vmax.f32 %v2047_v32, 0.0  ;;  %v2043_v26 = vadd.f32 %v3589_v24, %v3899_v29  ;;  %v2086_v42 = vmax.f32 %v2050_v40, 0.0  ;;  %v2046_v52 = vadd.f32 %v3610_v53, %v3900_v10  ;;  %v2199_v32 = vld [vmem:[%s3862_s7 + $0x8] sm:$0xff]  ;;  %v2217_v40 = vld [vmem:[%s3862_s7 + $0x98] sm:$0xff] }
 0x286   : > { %2120 = vmatpush.msra.mxu1 %v2102_v0  ;;  %2163 = vmatpush.msrb.mxu3 %v2097_v49  ;;  %v2074_v21 = vadd.f32 %v3610_v53, %v1960_v23  ;;  %v2072_v33 = vadd.f32 %v3610_v53, %v1958_v36  ;;  %v2081_v8 = vmax.f32 %v2045_v17, 0.0  ;;  %v2041_v47 = vadd.f32 %v3589_v24, %v3901_v55  ;;  %v2208_v49 = vld [vmem:[%s3862_s7 + $0x50] sm:$0xff]  ;;  %v3902_v0 = vld [vmem:[#allocation16_spill] sm:$0xff]  ;;  %v2215_v2 = vld [vmem:[%s3862_s7 + $0x88] sm:$0xff] }
 0x287   : > { %v1891_v36 = vsel %vm803_vm2, %v1887_v16, %v1889_v11  ;;  %v2084_v23 = vmax.f32 %v2048_v30, 0.0  ;;  %v2044_v34 = vadd.f32 %v3610_v53, %v3902_v0  ;;  %v2082_v51 = vmax.f32 %v2046_v52, 0.0  ;;  %v2214_v17 = vld [vmem:[%s3862_s7 + $0x80] sm:$0xff] }
 0x288   : > { %2121 = vmatpush.msra.mxu1 %v2100_v18  ;;  %2164 = vmatpush.msrb.mxu3 %v2095_v54  ;;  %v2110_v62 = vmax.f32 %v2074_v21, 0.0  ;;  %v2108_v9 = vmax.f32 %v2072_v33, 0.0  ;;  %v3903_v54 = vld [vmem:[#allocation10_spill] sm:$0xff]  ;;  %v2079_v21 = vmax.f32 %v2043_v26, 0.0  ;;  %v2042_v15 = vadd.f32 %v3610_v53, %v3905_v7  ;;  %v2511_v26 = vld [vmem:[%s3863_s8] ss:$0 sm:$0xff] }
 0x289   : > { %v1604_v18 = vadd.f32 %v3904_v56, %v3903_v54  ;;  %v2077_v11 = vmax.f32 %v2041_v47, 0.0  ;;  %v2080_v33 = vmax.f32 %v2044_v34, 0.0  ;;  %v2075_v57 = vadd.f32 %v3589_v24, %v3636_v39  ;;  %v2204_v39 = vld [vmem:[%s3862_s7 + $0x30] sm:$0xff] }
 0x28a   : > { %2122 = vmatpush.msra.mxu1 %v2098_v22  ;;  %2152 = vmatpush.msrb.mxu2 %v2110_v62  ;;  %v2040_v22 = vadd.f32 %v3610_v53, %v3906_v50  ;;  %v2206_v62 = vld [vmem:[%s3862_s7 + $0x40] sm:$0xff]  ;;  %v2078_v4 = vmax.f32 %v2042_v15, 0.0  ;;  %v2205_v53 = vld [vmem:[%s3862_s7 + $0x38] sm:$0xff] }
 0x28b   : > { %2165 = vmatpush.msrb.mxu3 %v2093_v27  ;;  %v1959_v16 = vadd.f32 %v1891_v36, %v1604_v18  ;;  %v2112_v27 = vld [vmem:[%s3861_s6] sm:$0xff]  ;;  %v2111_v58 = vmax.f32 %v2075_v57, 0.0 }
 0x28c   : > { %2123 = vmatpush.msra.mxu1 %v2096_v63  ;;  %2153 = vmatpush.msrb.mxu2 %v2108_v9  ;;  %v2076_v9 = vmax.f32 %v2040_v22, 0.0 }
 0x28d   : > { %2166 = vmatpush.msrb.mxu3 %v2091_v48  ;;  %2436 = vmatmul.msk.f32.vlgmr.msrb.gmra.mxu2 %vm2114_vm3, %v3676_v46  ;;  %v2073_v63 = vadd.f32 %v3589_v24, %v1959_v16  ;;  %v2203_v48 = vld [vmem:[%s3862_s7 + $0x28] sm:$0xff]  ;;  %v2229_v24 = vld [vmem:[%s3862_s7 + $0xf8] sm:$0xff] }
 0x28e   : > { %2124 = vmatpush.msra.mxu1 %v2094_v41  ;;  %2234 = vmatpush.msra.mxu2 %v2213_v6  ;;  %v2202_v6 = vld [vmem:[%s3862_s7 + $0x20] sm:$0xff]  ;;  %v2228_v41 = vld [vmem:[%s3862_s7 + $0xf0] sm:$0xff] }
 0x28f   : > { %2167 = vmatpush.msrb.mxu3 %v2089_v45  ;;  %v2109_v60 = vmax.f32 %v2073_v63, 0.0  ;;  %v2227_v45 = vld [vmem:[%s3862_s7 + $0xe8] sm:$0xff] }
 0x290   : > { %2125 = vmatpush.msra.mxu1 %v2092_v25  ;;  %2235 = vmatpush.msra.mxu2 %v2212_v61  ;;  %v2226_v61 = vld [vmem:[%s3862_s7 + $0xe0] sm:$0xff]  ;;  %v2225_v25 = vld [vmem:[%s3862_s7 + $0xd8] sm:$0xff] }
 0x291   : > { %2168 = vmatpush.msrb.mxu3 %v2087_v19  ;;  %v2222_v19 = vld [vmem:[%s3862_s7 + $0xc0] sm:$0xff] }
 0x292   : > { %2126 = vmatpush.msra.mxu1 %v2090_v43  ;;  %2236 = vmatpush.msra.mxu2 %v2211_v31  ;;  %v2219_v31 = vld [vmem:[%s3862_s7 + $0xa8] sm:$0xff]  ;;  %v2198_v43 = vld [vmem:[%s3862_s7] sm:$0xff] }
 0x293   : > { %2169 = vmatpush.msrb.mxu3 %v2085_v3  ;;  %v2216_v3 = vld [vmem:[%s3862_s7 + $0x90] sm:$0xff] }
 0x294   : > { %2127 = vmatpush.msra.mxu1 %v2088_v37  ;;  %2237 = vmatpush.msra.mxu2 %v2210_v59 }
 0x295   : > { %2170 = vmatpush.msrb.mxu3 %v2083_v35 }
 0x296   : > { %2128 = vmatpush.msra.mxu1 %v2086_v42  ;;  %2238 = vmatpush.msra.mxu2 %v2209_v1 }
 0x297   : > { %2171 = vmatpush.msrb.mxu3 %v2081_v8 }
 0x298   : > { %2129 = vmatpush.msra.mxu1 %v2084_v23  ;;  %2239 = vmatpush.msra.mxu2 %v2208_v49 }
 0x299   : > { %2172 = vmatpush.msrb.mxu3 %v2079_v21 }
 0x29a   : > { %2130 = vmatpush.msra.mxu1 %v2082_v51  ;;  %2240 = vmatpush.msra.mxu2 %v2207_v5 }
 0x29b   : > { %2173 = vmatpush.msrb.mxu3 %v2077_v11 }
 0x29c   : > { %2131 = vmatpush.msra.mxu1 %v2080_v33  ;;  %2174 = vmatmul.f32.vlgmr.msrb.gmra.mxu3 %v2112_v27 }
 0x29d   : > { %2241 = vmatpush.msra.mxu2 %v2206_v62 }
 0x29e   : > { %2132 = vmatpush.msra.mxu1 %v2078_v4 }
 0x29f   : > { %2242 = vmatpush.msra.mxu2 %v2205_v53 }
 0x2a0   : > { %2133 = vmatpush.msra.mxu1 %v2076_v9 }
 0x2a1   : > { %2243 = vmatpush.msra.mxu2 %v2204_v39  ;;  %2134 = vmatmul.f32.vlgmr.msra.gmra.mxu1 %v2112_v27 }
 0x2a2   : > { %2192 = vmatpush.msrb.mxu1 %v2111_v58 }
 0x2a3   : > { %2244 = vmatpush.msra.mxu2 %v2203_v48 }
 0x2a4   : > { %2193 = vmatpush.msrb.mxu1 %v2109_v60 }
 0x2a5   : > { %2245 = vmatpush.msra.mxu2 %v2202_v6 }
 0x2a6   : > { %2254 = vmatpush.msra.mxu1 %v2229_v24 }
 0x2a7   : > { %2246 = vmatpush.msra.mxu2 %v2201_v38 }
 0x2a8   : > { %2255 = vmatpush.msra.mxu1 %v2228_v41 }
 0x2a9   : > { %2247 = vmatpush.msra.mxu2 %v2200_v44  ;;  %2437 = vmatmul.msk.f32.vlgmr.msrb.gmra.mxu1 %vm2114_vm3, %v3676_v46  ;;  %v2221_v46 = vld [vmem:[%s3862_s7 + $0xb8] sm:$0xff] }
 0x2aa   : > { %2256 = vmatpush.msra.mxu1 %v2227_v45 }
 0x2ab   : > { %2248 = vmatpush.msra.mxu2 %v2199_v32 }
 0x2ac   : > { %2257 = vmatpush.msra.mxu1 %v2226_v61 }
 0x2ad   : > { %2249 = vmatpush.msra.mxu2 %v2198_v43 }
 0x2ae   : > { %2258 = vmatpush.msra.mxu1 %v2225_v25 }
 0x2b0   : > { %2259 = vmatpush.msra.mxu1 %v2224_v28 }
 0x2b2   : > { %2260 = vmatpush.msra.mxu1 %v2223_v12 }
 0x2b4   : > { %2261 = vmatpush.msra.mxu1 %v2222_v19 }
 0x2b6   : > { %2262 = vmatpush.msra.mxu1 %v2221_v46 }
 0x2b8   : > { %2263 = vmatpush.msra.mxu1 %v2220_v20 }
 0x2ba   : > { %2264 = vmatpush.msra.mxu1 %v2219_v31 }
 0x2bc   : > { %2265 = vmatpush.msra.mxu1 %v2218_v14 }
 0x2be   : > { %2266 = vmatpush.msra.mxu1 %v2217_v40 }
 0x2c0   : > { %2267 = vmatpush.msra.mxu1 %v2216_v3 }
 0x2c2   : > { %2268 = vmatpush.msra.mxu1 %v2215_v2 }
 0x2c4   : > { %2269 = vmatpush.msra.mxu1 %v2214_v17 }
 0x310   : > { %v2155_v59 = vpop.f32.mrf.mxu2 }
 0x31e   : > { %v2135_v37 = vpop.f32.mrf.mxu1 }
 0x31f   : > { %v2156_v13 = vadd.f32 %v2155_v59, %v2135_v37  ;;  %v2175_v30 = vpop.f32.mrf.mxu3 }
 0x321   : > { %2250 = vmatmul.f32.vlgmr.msra.gmra.mxu2 %v2156_v13 }
 0x326   : > { %v2195_v35 = vpop.f32.mrf.mxu1 }
 0x327   : > { %v2196_v29 = vadd.f32 %v2195_v35, %v2175_v30 }
 0x329   : > { %2270 = vmatmul.f32.vlgmr.msra.gmra.mxu1 %v2196_v29 }
 0x3a4   : > { %v2251_v1 = vpop.f32.mrf.mxu2 }
 0x3a5   : > { %v2252_v42 = vadd.f32 %v2511_v26, %v2251_v1 }
 0x3a6   : > { %v2271_v10 = vpop.f32.mrf.mxu1 }
 0x3a7   : > { %v2272_v52 = vadd.f32 %v2271_v10, %v2252_v42 }
 0x3a9   : > { %2274 = vst [vmem:[%s343_s14] sm:$0xff] %v2272_v52 }
 0x3aa   : > { %2569 = shalt.err (!%p2566_p8)
}
 0x3ab   : > { %2458 = dma.vmem_to_hbm [thread:$0]  (%p2702_p5), %s2289_s22, 128, %s2291_s23, %s2276_s13  }
 0x3ac PF: > { %p2470_p9 = scmp.ge.s32.totalorder %s2608_s12, 2  ;;  %s2302_s25 = sand.u32 1, %s2596_s30  }
 0x3ad   : > { %s2303_s21 = scalar_lea.sflag [#allocation6], %s2302_s25 }
 0x3ae   : > { %p2465_p10 = pnand %p2470_p9, %p2706_p6 }
 0x3b0   : > { %p2466_p11 = pneg %p2465_p10 }
 0x3b2   : > { %2591 = dma.done.wait (%p2466_p11), %s2303_s21, 128  }
 0x3b3   : > { %2593 = vsyncadd (%p2466_p11), %s2303_s21, 4294967168  ;;  %p20_p12 = scmp.ge.s32.totalorder %s2689_s15, 4   ;;  %s3907_s30 = smov %s2600_s10 }
 0x3b4   : > { %s3908_s10 = smov %s2604_s11  ;;  %s3909_s11 = smov %s2700_s18 }
 0x3b5   : > { %s3910_s12 = smov %s2689_s15  ;;  %22 = sbr.rel (!%p20_p12) target bundleno = 4 (0x4), region = 100 }
 0x3ba   :  { %2309 = vsyncpa [#allocation5], 1 }
 0x3bb   :  { %2311 = vsyncpa [#allocation5 + $0x1], 1 }
 0x3bc   :  { %2312 = vsyncpa [#allocation6], 1 }
 0x3bd   :  { %2314 = vsyncpa [#allocation6 + $0x1], 1 }

</bundles_post_ra>
